<compile_context>
chip_gen: v7x
topology: tpu7x:2x2x1
jax: 0.10.0
libtpu: 0.0.40
codegen_flags: <defaults>
</compile_context>

<pallas_src>
import functools
import math

import jax
import jax.numpy as jnp
from jax.experimental import pallas as pl
from jax.experimental.pallas import tpu as pltpu

EPS = 1e-5
_LANE = 128
_STATS_ROWS = 8          # sublane-aligned stats block (rows 0..3 used)


def _round_up(x, m):
    return (x + m - 1) // m * m


def _tpu_vmem_capacity():
    try:
        info = pltpu.get_tpu_info()
        cap = int(getattr(info, "vmem_capacity_bytes", 0))
        if cap > 0:
            return cap
    except Exception:
        pass
    return 64 << 20      # conservative fallback (v7x per-TC VMEM)


_VMEM_CAP = _tpu_vmem_capacity()
_MAX_TILE_M = 1024 if _VMEM_CAP >= (100 << 20) else 512   # v5e/v6e: 128 MiB -> 1024


def _pick_tile_m(m):
    """Tile (multiple of 128, <= _MAX_TILE_M) that minimizes zero-row padding;
    ties broken toward the larger tile (amortizes per-grid-step overhead)."""
    best_t, best_pad = _LANE, None
    t = _LANE
    while t <= _MAX_TILE_M:
        pad = _round_up(m, t) - m
        if best_pad is None or pad <= best_pad:
            best_t, best_pad = t, pad
        t += _LANE
    return best_t


def _dbuf(shape, dtype):
    """Bytes for one double-buffered VMEM block."""
    return 2 * math.prod(shape) * jnp.dtype(dtype).itemsize


def _vmem_limit(block_bytes):
    need = sum(block_bytes) + (8 << 20)                    # compiler-internal headroom
    cap = max(_VMEM_CAP - (8 << 20), 32 << 20)
    return int(min(max(need, 32 << 20), cap))


def _pad2d(a, rows=None, cols=None):
    pr = 0 if rows is None else rows - a.shape[0]
    pc = 0 if cols is None else cols - a.shape[1]
    if pr or pc:
        a = jnp.pad(a, ((0, pr), (0, pc)))
    return a


# --------------------------- pass-1 kernels (matmul + stats) --------------------------- #
# grid = (n_shards, tiles_per_shard); stats block is resident per shard across the
# inner ("arbitrary") axis.  Conv results are stored bf16; sums stay f32.

def _conv_stats_kernel(p_ref, w_ref, c_ref, stats_ref):
    @pl.when(pl.program_id(1) == 0)
    def _():
        stats_ref[...] = jnp.zeros_like(stats_ref)

    c = jnp.dot(p_ref[...], w_ref[...], preferred_element_type=jnp.float32)
    c_ref[...] = c.astype(c_ref.dtype)
    stats_ref[0:1, :] += jnp.sum(c, axis=0, keepdims=True)
    stats_ref[1:2, :] += jnp.sum(c * c, axis=0, keepdims=True)


def _conv_proj_stats_kernel(p_ref, w_ref, sx_ref, ws_ref, c_ref, s_ref, stats_ref):
    @pl.when(pl.program_id(1) == 0)
    def _():
        stats_ref[...] = jnp.zeros_like(stats_ref)

    c = jnp.dot(p_ref[...], w_ref[...], preferred_element_type=jnp.float32)
    s = jnp.dot(sx_ref[...], ws_ref[...], preferred_element_type=jnp.float32)
    c_ref[...] = c.astype(c_ref.dtype)
    s_ref[...] = s.astype(s_ref.dtype)
    stats_ref[0:1, :] += jnp.sum(c, axis=0, keepdims=True)
    stats_ref[1:2, :] += jnp.sum(c * c, axis=0, keepdims=True)
    stats_ref[2:3, :] += jnp.sum(s, axis=0, keepdims=True)
    stats_ref[3:4, :] += jnp.sum(s * s, axis=0, keepdims=True)


# --------------------------- pass-2 kernels (normalize + relu) ------------------------- #

def _bn_stats(st, row, inv_m):
    mean = st[row:row + 1, :] * inv_m
    var = jnp.maximum(st[row + 1:row + 2, :] * inv_m - mean * mean, 0.0)
    return mean, var


def _bn_relu_kernel(c_ref, st_ref, g_ref, b_ref, o_ref, *, inv_m):
    st = st_ref[...]
    mean, var = _bn_stats(st, 0, inv_m)
    c = c_ref[...].astype(jnp.float32)
    y = (c - mean) * (g_ref[...] * jax.lax.rsqrt(var + EPS)) + b_ref[...]
    o_ref[...] = jnp.maximum(y, 0.0).astype(o_ref.dtype)


def _bn_add_relu_kernel(c_ref, st_ref, g_ref, b_ref, res_ref, o_ref, *, inv_m):
    st = st_ref[...]
    mean, var = _bn_stats(st, 0, inv_m)
    c = c_ref[...].astype(jnp.float32)
    y = (c - mean) * (g_ref[...] * jax.lax.rsqrt(var + EPS)) + b_ref[...]
    o_ref[...] = jnp.maximum(y + res_ref[...].astype(jnp.float32), 0.0).astype(o_ref.dtype)


def _bn_proj_add_relu_kernel(c_ref, s_ref, st_ref, g_ref, b_ref, gs_ref, bs_ref, o_ref,
                             *, inv_m):
    st = st_ref[...]
    mc, vc = _bn_stats(st, 0, inv_m)
    ms, vs = _bn_stats(st, 2, inv_m)
    main = (c_ref[...].astype(jnp.float32) - mc) * (g_ref[...] * jax.lax.rsqrt(vc + EPS)) \
        + b_ref[...]
    short = (s_ref[...].astype(jnp.float32) - ms) * (gs_ref[...] * jax.lax.rsqrt(vs + EPS)) \
        + bs_ref[...]
    o_ref[...] = jnp.maximum(main + short, 0.0).astype(o_ref.dtype)


# ------------------------------------ pallas_call glue --------------------------------- #

def _conv_stats(patches, w, *, tm, n_shards, out_dtype=jnp.bfloat16):
    mp, k = patches.shape
    p = w.shape[1]
    tps = (mp // tm) // n_shards
    ob = jnp.dtype(out_dtype).itemsize
    vmem = _vmem_limit([_dbuf((tm, k), jnp.bfloat16), _dbuf((k, p), jnp.bfloat16),
                        _dbuf((tm, p), out_dtype), _dbuf((_STATS_ROWS, p), jnp.float32)])
    cost = pl.CostEstimate(
        flops=2 * mp * k * p, transcendentals=0,
        bytes_accessed=mp * k * 2 + k * p * 2 + mp * p * ob
        + n_shards * _STATS_ROWS * p * 4)
    c, st = pl.pallas_call(
        _conv_stats_kernel,
        out_shape=(jax.ShapeDtypeStruct((mp, p), out_dtype),
                   jax.ShapeDtypeStruct((_STATS_ROWS * n_shards, p), jnp.float32)),
        grid=(n_shards, tps),
        in_specs=[pl.BlockSpec((tm, k), lambda s, i: (s * tps + i, 0)),
                  pl.BlockSpec((k, p), lambda s, i: (0, 0))],      # weights VMEM-resident
        out_specs=(pl.BlockSpec((tm, p), lambda s, i: (s * tps + i, 0)),
                   pl.BlockSpec((_STATS_ROWS, p), lambda s, i: (s, 0))),  # per-shard acc
        compiler_params=pltpu.CompilerParams(
            dimension_semantics=("parallel", "arbitrary"), vmem_limit_bytes=vmem),
        cost_estimate=cost,
    )(patches, w)
    st = st.reshape(n_shards, _STATS_ROWS, p).sum(axis=0)          # tiny shard reduce
    return c, st


def _conv_proj_stats(patches, w, sx, ws, *, tm, n_shards, out_dtype=jnp.bfloat16):
    mp, k = patches.shape
    p = w.shape[1]
    cin = sx.shape[1]
    tps = (mp // tm) // n_shards
    ob = jnp.dtype(out_dtype).itemsize
    vmem = _vmem_limit([_dbuf((tm, k), jnp.bfloat16), _dbuf((k, p), jnp.bfloat16),
                        _dbuf((tm, cin), jnp.bfloat16), _dbuf((cin, p), jnp.bfloat16),
                        2 * _dbuf((tm, p), out_dtype),
                        _dbuf((_STATS_ROWS, p), jnp.float32)])
    cost = pl.CostEstimate(
        flops=2 * mp * (k + cin) * p, transcendentals=0,
        bytes_accessed=(mp * k + k * p + mp * cin + cin * p) * 2 + 2 * mp * p * ob
        + n_shards * _STATS_ROWS * p * 4)
    c, s, st = pl.pallas_call(
        _conv_proj_stats_kernel,
        out_shape=(jax.ShapeDtypeStruct((mp, p), out_dtype),
                   jax.ShapeDtypeStruct((mp, p), out_dtype),
                   jax.ShapeDtypeStruct((_STATS_ROWS * n_shards, p), jnp.float32)),
        grid=(n_shards, tps),
        in_specs=[pl.BlockSpec((tm, k), lambda s, i: (s * tps + i, 0)),
                  pl.BlockSpec((k, p), lambda s, i: (0, 0)),
                  pl.BlockSpec((tm, cin), lambda s, i: (s * tps + i, 0)),
                  pl.BlockSpec((cin, p), lambda s, i: (0, 0))],
        out_specs=(pl.BlockSpec((tm, p), lambda s, i: (s * tps + i, 0)),
                   pl.BlockSpec((tm, p), lambda s, i: (s * tps + i, 0)),
                   pl.BlockSpec((_STATS_ROWS, p), lambda s, i: (s, 0))),
        compiler_params=pltpu.CompilerParams(
            dimension_semantics=("parallel", "arbitrary"), vmem_limit_bytes=vmem),
        cost_estimate=cost,
    )(patches, w, sx, ws)
    st = st.reshape(n_shards, _STATS_ROWS, p).sum(axis=0)
    return c, s, st


def _bn_relu(conv, stats, g, b, *, inv_m, tm, out_dtype=jnp.float32):
    mp, p = conv.shape
    ob = jnp.dtype(out_dtype).itemsize
    vmem = _vmem_limit([_dbuf((tm, p), conv.dtype), _dbuf((tm, p), out_dtype),
                        _dbuf((_STATS_ROWS, p), jnp.float32),
                        2 * _dbuf((1, p), jnp.float32)])
    cost = pl.CostEstimate(
        flops=6 * mp * p, transcendentals=p,
        bytes_accessed=mp * p * (conv.dtype.itemsize + ob) + (_STATS_ROWS + 2) * p * 4)
    return pl.pallas_call(
        functools.partial(_bn_relu_kernel, inv_m=inv_m),
        out_shape=jax.ShapeDtypeStruct((mp, p), out_dtype),
        grid=(mp // tm,),
        in_specs=[pl.BlockSpec((tm, p), lambda i: (i, 0)),
                  pl.BlockSpec((_STATS_ROWS, p), lambda i: (0, 0)),
                  pl.BlockSpec((1, p), lambda i: (0, 0)),
                  pl.BlockSpec((1, p), lambda i: (0, 0))],
        out_specs=pl.BlockSpec((tm, p), lambda i: (i, 0)),
        compiler_params=pltpu.CompilerParams(
            dimension_semantics=("parallel",), vmem_limit_bytes=vmem),
        cost_estimate=cost,
    )(conv, stats, g, b)


def _bn_add_relu(conv, stats, g, b, res, *, inv_m, tm, out_dtype=jnp.float32):
    mp, p = conv.shape
    ob = jnp.dtype(out_dtype).itemsize
    vmem = _vmem_limit([_dbuf((tm, p), conv.dtype), _dbuf((tm, p), res.dtype),
                        _dbuf((tm, p), out_dtype), _dbuf((_STATS_ROWS, p), jnp.float32),
                        2 * _dbuf((1, p), jnp.float32)])
    cost = pl.CostEstimate(
        flops=7 * mp * p, transcendentals=p,
        bytes_accessed=mp * p * (conv.dtype.itemsize + res.dtype.itemsize + ob)
        + (_STATS_ROWS + 2) * p * 4)
    return pl.pallas_call(
        functools.partial(_bn_add_relu_kernel, inv_m=inv_m),
        out_shape=jax.ShapeDtypeStruct((mp, p), out_dtype),
        grid=(mp // tm,),
        in_specs=[pl.BlockSpec((tm, p), lambda i: (i, 0)),
                  pl.BlockSpec((_STATS_ROWS, p), lambda i: (0, 0)),
                  pl.BlockSpec((1, p), lambda i: (0, 0)),
                  pl.BlockSpec((1, p), lambda i: (0, 0)),
                  pl.BlockSpec((tm, p), lambda i: (i, 0))],
        out_specs=pl.BlockSpec((tm, p), lambda i: (i, 0)),
        compiler_params=pltpu.CompilerParams(
            dimension_semantics=("parallel",), vmem_limit_bytes=vmem),
        cost_estimate=cost,
    )(conv, stats, g, b, res)


def _bn_proj_add_relu(conv, short, stats, g, b, gs, bs, *, inv_m, tm,
                      out_dtype=jnp.float32):
    mp, p = conv.shape
    ob = jnp.dtype(out_dtype).itemsize
    vmem = _vmem_limit([_dbuf((tm, p), conv.dtype), _dbuf((tm, p), short.dtype),
                        _dbuf((tm, p), out_dtype), _dbuf((_STATS_ROWS, p), jnp.float32),
                        4 * _dbuf((1, p), jnp.float32)])
    cost = pl.CostEstimate(
        flops=13 * mp * p, transcendentals=2 * p,
        bytes_accessed=mp * p * (conv.dtype.itemsize + short.dtype.itemsize + ob)
        + (_STATS_ROWS + 4) * p * 4)
    return pl.pallas_call(
        functools.partial(_bn_proj_add_relu_kernel, inv_m=inv_m),
        out_shape=jax.ShapeDtypeStruct((mp, p), out_dtype),
        grid=(mp // tm,),
        in_specs=[pl.BlockSpec((tm, p), lambda i: (i, 0)),
                  pl.BlockSpec((tm, p), lambda i: (i, 0)),
                  pl.BlockSpec((_STATS_ROWS, p), lambda i: (0, 0)),
                  pl.BlockSpec((1, p), lambda i: (0, 0)),
                  pl.BlockSpec((1, p), lambda i: (0, 0)),
                  pl.BlockSpec((1, p), lambda i: (0, 0)),
                  pl.BlockSpec((1, p), lambda i: (0, 0))],
        out_specs=pl.BlockSpec((tm, p), lambda i: (i, 0)),
        compiler_params=pltpu.CompilerParams(
            dimension_semantics=("parallel",), vmem_limit_bytes=vmem),
        cost_estimate=cost,
    )(conv, short, stats, g, b, gs, bs)


# ------------------------------------- host-side glue ---------------------------------- #

def _im2col_3x3(x_nhwc, stride):
    """3x3, padding=1 im2col.  Returns ((M, 9*C) patches, (N, Ho, Wo))."""
    n, h, w, c = x_nhwc.shape
    ho = (h - 1) // stride + 1
    wo = (w - 1) // stride + 1
    xp = jnp.pad(x_nhwc, ((0, 0), (1, 1), (1, 1), (0, 0)))
    cols = []
    for kh in range(3):
        for kw in range(3):
            cols.append(xp[:, kh:kh + stride * ho:stride,
                           kw:kw + stride * wo:stride, :])
    patches = jnp.concatenate(cols, axis=-1)               # (N, Ho, Wo, 9*C)
    return patches.reshape(n * ho * wo, 9 * c), (n, ho, wo)


def init_basic_block_params(key, in_planes, planes, stride):
    ks = jax.random.split(key, 9)
    p = {
        "w1": 0.2 * jax.random.normal(ks[0], (planes, in_planes, 3, 3), jnp.float32),
        "g1": 1.0 + 0.1 * jax.random.normal(ks[1], (planes,), jnp.float32),
        "b1": 0.1 * jax.random.normal(ks[2], (planes,), jnp.float32),
        "w2": 0.2 * jax.random.normal(ks[3], (planes, planes, 3, 3), jnp.float32),
        "g2": 1.0 + 0.1 * jax.random.normal(ks[4], (planes,), jnp.float32),
        "b2": 0.1 * jax.random.normal(ks[5], (planes,), jnp.float32),
    }
    if stride != 1 or in_planes != planes:
        p["ws"] = 0.2 * jax.random.normal(ks[6], (planes, in_planes, 1, 1), jnp.float32)
        p["gs"] = 1.0 + 0.1 * jax.random.normal(ks[7], (planes,), jnp.float32)
        p["bs"] = 0.1 * jax.random.normal(ks[8], (planes,), jnp.float32)
    return p


def basic_block_forward(x_nchw, params, stride):
    in_planes = x_nchw.shape[1]
    planes = params["w1"].shape[0]
    p_pad = _round_up(planes, _LANE)                       # lane-dense output channels

    x = jnp.transpose(x_nchw, (0, 2, 3, 1)).astype(jnp.float32)   # NCHW -> NHWC
    n = x.shape[0]

    # ---------- conv1 (3x3, stride) + bn1 + relu ----------
    p1, (_, ho, wo) = _im2col_3x3(x, stride)
    m = n * ho * wo
    tm = _pick_tile_m(m)
    mp = _round_up(m, tm)                                  # zero rows add nothing to stats
    tiles = mp // tm
    n_shards = 2 if (tiles >= 2 and tiles % 2 == 0) else 1  # v7x 2-TC shard of pass 1
    inv_m = 1.0 / m

    k1 = _round_up(9 * in_planes, _LANE)                   # lane-dense contraction dim
    p1 = _pad2d(p1, rows=mp, cols=k1).astype(jnp.bfloat16)
    w1m = _pad2d(jnp.transpose(params["w1"], (2, 3, 1, 0)).reshape(9 * in_planes, planes),
                 rows=k1, cols=p_pad).astype(jnp.bfloat16)
    g1 = _pad2d(params["g1"][None, :], cols=p_pad)
    b1 = _pad2d(params["b1"][None, :], cols=p_pad)

    c1, st1 = _conv_stats(p1, w1m, tm=tm, n_shards=n_shards)
    out1 = _bn_relu(c1, st1, g1, b1, inv_m=inv_m, tm=tm, out_dtype=jnp.bfloat16)
    out1 = out1[:m, :planes].reshape(n, ho, wo, planes)    # drop pad rows / channels

    # ---------- conv2 (3x3, stride 1) + bn2 + shortcut + relu ----------
    k2 = _round_up(9 * planes, _LANE)
    p2, _ = _im2col_3x3(out1, 1)                           # stays bf16
    p2 = _pad2d(p2, rows=mp, cols=k2)
    w2m = _pad2d(jnp.transpose(params["w2"], (2, 3, 1, 0)).reshape(9 * planes, planes),
                 rows=k2, cols=p_pad).astype(jnp.bfloat16)
    g2 = _pad2d(params["g2"][None, :], cols=p_pad)
    b2 = _pad2d(params["b2"][None, :], cols=p_pad)

    if "ws" in params:
        # projection shortcut: 1x1 conv + BN, fused into the same M-tile loop.
        cin_pad = _round_up(in_planes, _LANE)
        sx = _pad2d(x[:, ::stride, ::stride, :].reshape(m, in_planes),
                    rows=mp, cols=cin_pad).astype(jnp.bfloat16)
        wsm = _pad2d(params["ws"].reshape(planes, in_planes).T,
                     rows=cin_pad, cols=p_pad).astype(jnp.bfloat16)
        gs = _pad2d(params["gs"][None, :], cols=p_pad)
        bs = _pad2d(params["bs"][None, :], cols=p_pad)
        c2, s2, st = _conv_proj_stats(p2, w2m, sx, wsm, tm=tm, n_shards=n_shards)
        out = _bn_proj_add_relu(c2, s2, st, g2, b2, gs, bs, inv_m=inv_m, tm=tm)
    else:
        # identity shortcut (stride==1, in_planes==planes): stream residual as bf16.
        res = _pad2d(x.reshape(m, in_planes), rows=mp, cols=p_pad).astype(jnp.bfloat16)
        c2, st2 = _conv_stats(p2, w2m, tm=tm, n_shards=n_shards)
        out = _bn_add_relu(c2, st2, g2, b2, res, inv_m=inv_m, tm=tm)

    out = out[:m, :planes].reshape(n, ho, wo, planes)
    return jnp.transpose(out, (0, 3, 1, 2))                # NHWC -> NCHW


# --------------------------------- pure-JAX reference ----------------------------------- #

def _ref_forward(x_nchw, params, stride):
    def bn(y, g, b):
        mu = y.mean(axis=(0, 2, 3), keepdims=True)
        vr = ((y - mu) ** 2).mean(axis=(0, 2, 3), keepdims=True)
        return (y - mu) * jax.lax.rsqrt(vr + EPS) * g[None, :, None, None] \
            + b[None, :, None, None]

    def conv(y, w, s, pad):
        return jax.lax.conv_general_dilated(
            y, w, (s, s), pad, dimension_numbers=("NCHW", "OIHW", "NCHW"))

    out = jax.nn.relu(bn(conv(x_nchw, params["w1"], stride, [(1, 1), (1, 1)]),
                         params["g1"], params["b1"]))
    out = bn(conv(out, params["w2"], 1, [(1, 1), (1, 1)]), params["g2"], params["b2"])
    if "ws" in params:
        sc = bn(conv(x_nchw, params["ws"], stride, [(0, 0), (0, 0)]),
                params["gs"], params["bs"])
    else:
        sc = x_nchw
    return jax.nn.relu(out + sc)


if __name__ == "__main__":
    key = jax.random.PRNGKey(0)
    k_x, k_p1, k_p2 = jax.random.split(key, 3)

    fwd = jax.jit(basic_block_forward, static_argnums=(2,))

    # Case 1: projection shortcut (stride 2, channel expansion 4 -> 8).
    in_planes, planes, stride = 4, 8, 2
    x = jax.random.normal(k_x, (2, in_planes, 16, 16), jnp.float32)
    params = init_basic_block_params(k_p1, in_planes, planes, stride)
    out = jax.block_until_ready(fwd(x, params, stride))
    ref = jax.block_until_ready(_ref_forward(x, params, stride))
    assert out.shape == (2, planes, 8, 8), out.shape
    tol = 1e-2 + 1e-2 * float(jnp.max(jnp.abs(ref)))       # bf16 matmul/storage tolerance
    err = float(jnp.max(jnp.abs(out - ref)))
    if err > tol:
        raise AssertionError(f"projection block mismatch: max|diff|={err} tol={tol}")

    # Case 2: identity shortcut (stride 1, 8 -> 8).
    in_planes2, planes2, stride2 = 8, 8, 1
    x2 = jax.random.normal(k_x, (2, in_planes2, 16, 16), jnp.float32)
    params2 = init_basic_block_params(k_p2, in_planes2, planes2, stride2)
    out2 = jax.block_until_ready(fwd(x2, params2, stride2))
    ref2 = jax.block_until_ready(_ref_forward(x2, params2, stride2))
    assert out2.shape == (2, planes2, 16, 16), out2.shape
    tol2 = 1e-2 + 1e-2 * float(jnp.max(jnp.abs(ref2)))
    err2 = float(jnp.max(jnp.abs(out2 - ref2)))
    if err2 > tol2:
        raise AssertionError(f"identity block mismatch: max|diff|={err2} tol={tol2}")

    print("KERNEL_OK")
</pallas_src>

<mosaic_0001>
module attributes {stable_mosaic.version = 11 : i64} {
  func.func @_conv_stats_kernel(%arg0: i32, %arg1: i32, %arg2: memref<128x128xbf16, #tpu.memory_space<vmem>>, %arg3: memref<128x128xbf16, #tpu.memory_space<vmem>>, %arg4: memref<128x128xbf16, #tpu.memory_space<vmem>>, %arg5: memref<8x128xf32, #tpu.memory_space<vmem>>) attributes {dimension_semantics = [#tpu.dimension_semantics<parallel>, #tpu.dimension_semantics<arbitrary>], iteration_bounds = array<i64: 1, 1>, scalar_prefetch = 0 : i64, scratch_operands = 0 : i64, tpu.core_type = #tpu.core_type<tc>, window_params = [{transform_indices = @transform_0, window_bounds = array<i64: 128, 128>}, {pipeline_mode = #tpu.pipeline_mode<synchronous>, transform_indices = @transform_1, window_bounds = array<i64: 128, 128>}, {transform_indices = @transform_2, window_bounds = array<i64: 128, 128>}, {transform_indices = @transform_3, window_bounds = array<i64: 8, 128>}]} {
    %c0_i32 = arith.constant 0 : i32
    %0 = arith.cmpi eq, %arg1, %c0_i32 : i32
    %1 = arith.extui %0 : i1 to i32
    %c0_i32_0 = arith.constant 0 : i32
    %2 = arith.cmpi ne, %1, %c0_i32_0 : i32
    scf.if %2 {
      %cst_15 = arith.constant 0.000000e+00 : f32
      %19 = vector.broadcast %cst_15 : f32 to vector<8x128xf32>
      %c0_16 = arith.constant 0 : index
      %c0_17 = arith.constant 0 : index
      %20 = vector.load %arg5[%c0_16, %c0_17] : memref<8x128xf32, #tpu.memory_space<vmem>>, vector<8x128xf32>
      tpu.vector_store %arg5[%c0_16, %c0_17], %19 {strides = array<i32>} : memref<8x128xf32, #tpu.memory_space<vmem>>, vector<8x128xf32>,
    } else {
    }
    %c0 = arith.constant 0 : index
    %c0_1 = arith.constant 0 : index
    %3 = vector.load %arg2[%c0, %c0_1] : memref<128x128xbf16, #tpu.memory_space<vmem>>, vector<128x128xbf16>
    %c0_2 = arith.constant 0 : index
    %c0_3 = arith.constant 0 : index
    %4 = vector.load %arg3[%c0_2, %c0_3] : memref<128x128xbf16, #tpu.memory_space<vmem>>, vector<128x128xbf16>
    %cst = arith.constant dense<0.000000e+00> : vector<128x128xf32>
    %5 = tpu.matmul %3, %4, %cst {dimension_numbers = #tpu.dot_dimension_numbers<[1], [0], [0], [1], [0, 0, 1, 1], [], []>} : vector<128x128xbf16>, vector<128x128xbf16>, vector<128x128xf32> -> vector<128x128xf32>
    %6 = arith.truncf %5 : vector<128x128xf32> to vector<128x128xbf16>
    %c0_4 = arith.constant 0 : index
    %c0_5 = arith.constant 0 : index
    %7 = vector.load %arg4[%c0_4, %c0_5] : memref<128x128xbf16, #tpu.memory_space<vmem>>, vector<128x128xbf16>
    tpu.vector_store %arg4[%c0_4, %c0_5], %6 {strides = array<i32>} : memref<128x128xbf16, #tpu.memory_space<vmem>>, vector<128x128xbf16>,
    %c0_6 = arith.constant 0 : index
    %c0_7 = arith.constant 0 : index
    %8 = vector.load %arg5[%c0_6, %c0_7] : memref<8x128xf32, #tpu.memory_space<vmem>>, vector<1x128xf32>
    %cst_8 = arith.constant dense<0.000000e+00> : vector<128xf32>
    %9 = vector.multi_reduction <add>, %5, %cst_8 [0] : vector<128x128xf32> to vector<128xf32>
    %10 = vector.shape_cast %9 : vector<128xf32> to vector<1x128xf32>
    %11 = arith.addf %8, %10 : vector<1x128xf32>
    %c0_9 = arith.constant 0 : index
    %c0_10 = arith.constant 0 : index
    %12 = vector.load %arg5[%c0_9, %c0_10] : memref<8x128xf32, #tpu.memory_space<vmem>>, vector<1x128xf32>
    tpu.vector_store %arg5[%c0_9, %c0_10], %11 {strides = array<i32>} : memref<8x128xf32, #tpu.memory_space<vmem>>, vector<1x128xf32>,
    %c1 = arith.constant 1 : index
    %c0_11 = arith.constant 0 : index
    %13 = vector.load %arg5[%c1, %c0_11] : memref<8x128xf32, #tpu.memory_space<vmem>>, vector<1x128xf32>
    %14 = arith.mulf %5, %5 : vector<128x128xf32>
    %cst_12 = arith.constant dense<0.000000e+00> : vector<128xf32>
    %15 = vector.multi_reduction <add>, %14, %cst_12 [0] : vector<128x128xf32> to vector<128xf32>
    %16 = vector.shape_cast %15 : vector<128xf32> to vector<1x128xf32>
    %17 = arith.addf %13, %16 : vector<1x128xf32>
    %c1_13 = arith.constant 1 : index
    %c0_14 = arith.constant 0 : index
    %18 = vector.load %arg5[%c1_13, %c0_14] : memref<8x128xf32, #tpu.memory_space<vmem>>, vector<1x128xf32>
    tpu.vector_store %arg5[%c1_13, %c0_14], %17 {strides = array<i32>} : memref<8x128xf32, #tpu.memory_space<vmem>>, vector<1x128xf32>,
    return
  }
  func.func @transform_0(%arg0: i32, %arg1: i32) -> (i32, i32) {
    %c1_i32 = arith.constant 1 : i32
    %0 = arith.muli %arg0, %c1_i32 : i32
    %1 = arith.addi %0, %arg1 : i32
    %c0_i32 = arith.constant 0 : i32
    %c0_i32_0 = arith.constant 0 : i32
    return %1, %c0_i32 : i32, i32
  }
  func.func @transform_1(%arg0: i32, %arg1: i32) -> (i32, i32) {
    %c0_i32 = arith.constant 0 : i32
    %c0_i32_0 = arith.constant 0 : i32
    %c0_i32_1 = arith.constant 0 : i32
    return %c0_i32, %c0_i32_0 : i32, i32
  }
  func.func @transform_2(%arg0: i32, %arg1: i32) -> (i32, i32) {
    %c1_i32 = arith.constant 1 : i32
    %0 = arith.muli %arg0, %c1_i32 : i32
    %1 = arith.addi %0, %arg1 : i32
    %c0_i32 = arith.constant 0 : i32
    %c0_i32_0 = arith.constant 0 : i32
    return %1, %c0_i32 : i32, i32
  }
  func.func @transform_3(%arg0: i32, %arg1: i32) -> (i32, i32) {
    %c0_i32 = arith.constant 0 : i32
    %c0_i32_0 = arith.constant 0 : i32
    return %arg0, %c0_i32 : i32, i32
  }
}

module attributes {stable_mosaic.version = 11 : i64} {
  func.func @_bn_relu_kernel(%arg0: i32, %arg1: memref<128x128xbf16, #tpu.memory_space<vmem>>, %arg2: memref<8x128xf32, #tpu.memory_space<vmem>>, %arg3: memref<1x128xf32, #tpu.memory_space<vmem>>, %arg4: memref<1x128xf32, #tpu.memory_space<vmem>>, %arg5: memref<128x128xbf16, #tpu.memory_space<vmem>>) attributes {dimension_semantics = [#tpu.dimension_semantics<parallel>], iteration_bounds = array<i64: 1>, scalar_prefetch = 0 : i64, scratch_operands = 0 : i64, tpu.core_type = #tpu.core_type<tc>, window_params = [{transform_indices = @transform_0, window_bounds = array<i64: 128, 128>}, {pipeline_mode = #tpu.pipeline_mode<synchronous>, transform_indices = @transform_1, window_bounds = array<i64: 8, 128>}, {pipeline_mode = #tpu.pipeline_mode<synchronous>, transform_indices = @transform_2, window_bounds = array<i64: 1, 128>}, {pipeline_mode = #tpu.pipeline_mode<synchronous>, transform_indices = @transform_3, window_bounds = array<i64: 1, 128>}, {transform_indices = @transform_4, window_bounds = array<i64: 128, 128>}]} {
    %c0 = arith.constant 0 : index
    %c0_0 = arith.constant 0 : index
    %0 = vector.load %arg2[%c0, %c0_0] : memref<8x128xf32, #tpu.memory_space<vmem>>, vector<8x128xf32>
    %1 = vector.extract_strided_slice %0 {offsets = [0, 0], sizes = [1, 128], strides = [1, 1]} : vector<8x128xf32> to vector<1x128xf32>
    %cst = arith.constant 7.812500e-03 : f32
    %2 = vector.broadcast %cst : f32 to vector<1x128xf32>
    %3 = arith.mulf %1, %2 : vector<1x128xf32>
    %4 = vector.extract_strided_slice %0 {offsets = [1, 0], sizes = [1, 128], strides = [1, 1]} : vector<8x128xf32> to vector<1x128xf32>
    %cst_1 = arith.constant 7.812500e-03 : f32
    %5 = vector.broadcast %cst_1 : f32 to vector<1x128xf32>
    %6 = arith.mulf %4, %5 : vector<1x128xf32>
    %7 = arith.mulf %3, %3 : vector<1x128xf32>
    %8 = arith.subf %6, %7 : vector<1x128xf32>
    %cst_2 = arith.constant 0.000000e+00 : f32
    %9 = vector.broadcast %cst_2 : f32 to vector<1x128xf32>
    %10 = arith.maximumf %8, %9 : vector<1x128xf32>
    %c0_3 = arith.constant 0 : index
    %c0_4 = arith.constant 0 : index
    %11 = vector.load %arg1[%c0_3, %c0_4] : memref<128x128xbf16, #tpu.memory_space<vmem>>, vector<128x128xbf16>
    %12 = arith.extf %11 : vector<128x128xbf16> to vector<128x128xf32>
    %13 = vector.broadcast %3 : vector<1x128xf32> to vector<128x128xf32>
    %14 = arith.subf %12, %13 : vector<128x128xf32>
    %c0_5 = arith.constant 0 : index
    %c0_6 = arith.constant 0 : index
    %15 = vector.load %arg3[%c0_5, %c0_6] : memref<1x128xf32, #tpu.memory_space<vmem>>, vector<1x128xf32>
    %cst_7 = arith.constant 9.99999974E-6 : f32
    %16 = vector.broadcast %cst_7 : f32 to vector<1x128xf32>
    %17 = arith.addf %10, %16 : vector<1x128xf32>
    %18 = math.rsqrt %17 : vector<1x128xf32>
    %19 = arith.mulf %15, %18 : vector<1x128xf32>
    %20 = vector.broadcast %19 : vector<1x128xf32> to vector<128x128xf32>
    %21 = arith.mulf %14, %20 : vector<128x128xf32>
    %c0_8 = arith.constant 0 : index
    %c0_9 = arith.constant 0 : index
    %22 = vector.load %arg4[%c0_8, %c0_9] : memref<1x128xf32, #tpu.memory_space<vmem>>, vector<1x128xf32>
    %23 = vector.broadcast %22 : vector<1x128xf32> to vector<128x128xf32>
    %24 = arith.addf %21, %23 : vector<128x128xf32>
    %cst_10 = arith.constant 0.000000e+00 : f32
    %25 = vector.broadcast %cst_10 : f32 to vector<128x128xf32>
    %26 = arith.maximumf %24, %25 : vector<128x128xf32>
    %27 = arith.truncf %26 : vector<128x128xf32> to vector<128x128xbf16>
    %c0_11 = arith.constant 0 : index
    %c0_12 = arith.constant 0 : index
    %28 = vector.load %arg5[%c0_11, %c0_12] : memref<128x128xbf16, #tpu.memory_space<vmem>>, vector<128x128xbf16>
    tpu.vector_store %arg5[%c0_11, %c0_12], %27 {strides = array<i32>} : memref<128x128xbf16, #tpu.memory_space<vmem>>, vector<128x128xbf16>,
    return
  }
  func.func @transform_0(%arg0: i32) -> (i32, i32) {
    %c0_i32 = arith.constant 0 : i32
    %c0_i32_0 = arith.constant 0 : i32
    return %arg0, %c0_i32 : i32, i32
  }
  func.func @transform_1(%arg0: i32) -> (i32, i32) {
    %c0_i32 = arith.constant 0 : i32
    %c0_i32_0 = arith.constant 0 : i32
    %c0_i32_1 = arith.constant 0 : i32
    return %c0_i32, %c0_i32_0 : i32, i32
  }
  func.func @transform_2(%arg0: i32) -> (i32, i32) {
    %c0_i32 = arith.constant 0 : i32
    %c0_i32_0 = arith.constant 0 : i32
    %c0_i32_1 = arith.constant 0 : i32
    return %c0_i32, %c0_i32_0 : i32, i32
  }
  func.func @transform_3(%arg0: i32) -> (i32, i32) {
    %c0_i32 = arith.constant 0 : i32
    %c0_i32_0 = arith.constant 0 : i32
    %c0_i32_1 = arith.constant 0 : i32
    return %c0_i32, %c0_i32_0 : i32, i32
  }
  func.func @transform_4(%arg0: i32) -> (i32, i32) {
    %c0_i32 = arith.constant 0 : i32
    %c0_i32_0 = arith.constant 0 : i32
    return %arg0, %c0_i32 : i32, i32
  }
}

module attributes {stable_mosaic.version = 11 : i64} {
  func.func @_conv_proj_stats_kernel(%arg0: i32, %arg1: i32, %arg2: memref<128x128xbf16, #tpu.memory_space<vmem>>, %arg3: memref<128x128xbf16, #tpu.memory_space<vmem>>, %arg4: memref<128x128xbf16, #tpu.memory_space<vmem>>, %arg5: memref<128x128xbf16, #tpu.memory_space<vmem>>, %arg6: memref<128x128xbf16, #tpu.memory_space<vmem>>, %arg7: memref<128x128xbf16, #tpu.memory_space<vmem>>, %arg8: memref<8x128xf32, #tpu.memory_space<vmem>>) attributes {dimension_semantics = [#tpu.dimension_semantics<parallel>, #tpu.dimension_semantics<arbitrary>], iteration_bounds = array<i64: 1, 1>, scalar_prefetch = 0 : i64, scratch_operands = 0 : i64, tpu.core_type = #tpu.core_type<tc>, window_params = [{transform_indices = @transform_0, window_bounds = array<i64: 128, 128>}, {pipeline_mode = #tpu.pipeline_mode<synchronous>, transform_indices = @transform_1, window_bounds = array<i64: 128, 128>}, {transform_indices = @transform_2, window_bounds = array<i64: 128, 128>}, {pipeline_mode = #tpu.pipeline_mode<synchronous>, transform_indices = @transform_3, window_bounds = array<i64: 128, 128>}, {transform_indices = @transform_4, window_bounds = array<i64: 128, 128>}, {transform_indices = @transform_5, window_bounds = array<i64: 128, 128>}, {transform_indices = @transform_6, window_bounds = array<i64: 8, 128>}]} {
    %c0_i32 = arith.constant 0 : i32
    %0 = arith.cmpi eq, %arg1, %c0_i32 : i32
    %1 = arith.extui %0 : i1 to i32
    %c0_i32_0 = arith.constant 0 : i32
    %2 = arith.cmpi ne, %1, %c0_i32_0 : i32
    scf.if %2 {
      %cst_30 = arith.constant 0.000000e+00 : f32
      %35 = vector.broadcast %cst_30 : f32 to vector<8x128xf32>
      %c0_31 = arith.constant 0 : index
      %c0_32 = arith.constant 0 : index
      %36 = vector.load %arg8[%c0_31, %c0_32] : memref<8x128xf32, #tpu.memory_space<vmem>>, vector<8x128xf32>
      tpu.vector_store %arg8[%c0_31, %c0_32], %35 {strides = array<i32>} : memref<8x128xf32, #tpu.memory_space<vmem>>, vector<8x128xf32>,
    } else {
    }
    %c0 = arith.constant 0 : index
    %c0_1 = arith.constant 0 : index
    %3 = vector.load %arg2[%c0, %c0_1] : memref<128x128xbf16, #tpu.memory_space<vmem>>, vector<128x128xbf16>
    %c0_2 = arith.constant 0 : index
    %c0_3 = arith.constant 0 : index
    %4 = vector.load %arg3[%c0_2, %c0_3] : memref<128x128xbf16, #tpu.memory_space<vmem>>, vector<128x128xbf16>
    %cst = arith.constant dense<0.000000e+00> : vector<128x128xf32>
    %5 = tpu.matmul %3, %4, %cst {dimension_numbers = #tpu.dot_dimension_numbers<[1], [0], [0], [1], [0, 0, 1, 1], [], []>} : vector<128x128xbf16>, vector<128x128xbf16>, vector<128x128xf32> -> vector<128x128xf32>
    %c0_4 = arith.constant 0 : index
    %c0_5 = arith.constant 0 : index
    %6 = vector.load %arg4[%c0_4, %c0_5] : memref<128x128xbf16, #tpu.memory_space<vmem>>, vector<128x128xbf16>
    %c0_6 = arith.constant 0 : index
    %c0_7 = arith.constant 0 : index
    %7 = vector.load %arg5[%c0_6, %c0_7] : memref<128x128xbf16, #tpu.memory_space<vmem>>, vector<128x128xbf16>
    %cst_8 = arith.constant dense<0.000000e+00> : vector<128x128xf32>
    %8 = tpu.matmul %6, %7, %cst_8 {dimension_numbers = #tpu.dot_dimension_numbers<[1], [0], [0], [1], [0, 0, 1, 1], [], []>} : vector<128x128xbf16>, vector<128x128xbf16>, vector<128x128xf32> -> vector<128x128xf32>
    %9 = arith.truncf %5 : vector<128x128xf32> to vector<128x128xbf16>
    %c0_9 = arith.constant 0 : index
    %c0_10 = arith.constant 0 : index
    %10 = vector.load %arg6[%c0_9, %c0_10] : memref<128x128xbf16, #tpu.memory_space<vmem>>, vector<128x128xbf16>
    tpu.vector_store %arg6[%c0_9, %c0_10], %9 {strides = array<i32>} : memref<128x128xbf16, #tpu.memory_space<vmem>>, vector<128x128xbf16>,
    %11 = arith.truncf %8 : vector<128x128xf32> to vector<128x128xbf16>
    %c0_11 = arith.constant 0 : index
    %c0_12 = arith.constant 0 : index
    %12 = vector.load %arg7[%c0_11, %c0_12] : memref<128x128xbf16, #tpu.memory_space<vmem>>, vector<128x128xbf16>
    tpu.vector_store %arg7[%c0_11, %c0_12], %11 {strides = array<i32>} : memref<128x128xbf16, #tpu.memory_space<vmem>>, vector<128x128xbf16>,
    %c0_13 = arith.constant 0 : index
    %c0_14 = arith.constant 0 : index
    %13 = vector.load %arg8[%c0_13, %c0_14] : memref<8x128xf32, #tpu.memory_space<vmem>>, vector<1x128xf32>
    %cst_15 = arith.constant dense<0.000000e+00> : vector<128xf32>
    %14 = vector.multi_reduction <add>, %5, %cst_15 [0] : vector<128x128xf32> to vector<128xf32>
    %15 = vector.shape_cast %14 : vector<128xf32> to vector<1x128xf32>
    %16 = arith.addf %13, %15 : vector<1x128xf32>
    %c0_16 = arith.constant 0 : index
    %c0_17 = arith.constant 0 : index
    %17 = vector.load %arg8[%c0_16, %c0_17] : memref<8x128xf32, #tpu.memory_space<vmem>>, vector<1x128xf32>
    tpu.vector_store %arg8[%c0_16, %c0_17], %16 {strides = array<i32>} : memref<8x128xf32, #tpu.memory_space<vmem>>, vector<1x128xf32>,
    %c1 = arith.constant 1 : index
    %c0_18 = arith.constant 0 : index
    %18 = vector.load %arg8[%c1, %c0_18] : memref<8x128xf32, #tpu.memory_space<vmem>>, vector<1x128xf32>
    %19 = arith.mulf %5, %5 : vector<128x128xf32>
    %cst_19 = arith.constant dense<0.000000e+00> : vector<128xf32>
    %20 = vector.multi_reduction <add>, %19, %cst_19 [0] : vector<128x128xf32> to vector<128xf32>
    %21 = vector.shape_cast %20 : vector<128xf32> to vector<1x128xf32>
    %22 = arith.addf %18, %21 : vector<1x128xf32>
    %c1_20 = arith.constant 1 : index
    %c0_21 = arith.constant 0 : index
    %23 = vector.load %arg8[%c1_20, %c0_21] : memref<8x128xf32, #tpu.memory_space<vmem>>, vector<1x128xf32>
    tpu.vector_store %arg8[%c1_20, %c0_21], %22 {strides = array<i32>} : memref<8x128xf32, #tpu.memory_space<vmem>>, vector<1x128xf32>,
    %c2 = arith.constant 2 : index
    %c0_22 = arith.constant 0 : index
    %24 = vector.load %arg8[%c2, %c0_22] : memref<8x128xf32, #tpu.memory_space<vmem>>, vector<1x128xf32>
    %cst_23 = arith.constant dense<0.000000e+00> : vector<128xf32>
    %25 = vector.multi_reduction <add>, %8, %cst_23 [0] : vector<128x128xf32> to vector<128xf32>
    %26 = vector.shape_cast %25 : vector<128xf32> to vector<1x128xf32>
    %27 = arith.addf %24, %26 : vector<1x128xf32>
    %c2_24 = arith.constant 2 : index
    %c0_25 = arith.constant 0 : index
    %28 = vector.load %arg8[%c2_24, %c0_25] : memref<8x128xf32, #tpu.memory_space<vmem>>, vector<1x128xf32>
    tpu.vector_store %arg8[%c2_24, %c0_25], %27 {strides = array<i32>} : memref<8x128xf32, #tpu.memory_space<vmem>>, vector<1x128xf32>,
    %c3 = arith.constant 3 : index
    %c0_26 = arith.constant 0 : index
    %29 = vector.load %arg8[%c3, %c0_26] : memref<8x128xf32, #tpu.memory_space<vmem>>, vector<1x128xf32>
    %30 = arith.mulf %8, %8 : vector<128x128xf32>
    %cst_27 = arith.constant dense<0.000000e+00> : vector<128xf32>
    %31 = vector.multi_reduction <add>, %30, %cst_27 [0] : vector<128x128xf32> to vector<128xf32>
    %32 = vector.shape_cast %31 : vector<128xf32> to vector<1x128xf32>
    %33 = arith.addf %29, %32 : vector<1x128xf32>
    %c3_28 = arith.constant 3 : index
    %c0_29 = arith.constant 0 : index
    %34 = vector.load %arg8[%c3_28, %c0_29] : memref<8x128xf32, #tpu.memory_space<vmem>>, vector<1x128xf32>
    tpu.vector_store %arg8[%c3_28, %c0_29], %33 {strides = array<i32>} : memref<8x128xf32, #tpu.memory_space<vmem>>, vector<1x128xf32>,
    return
  }
  func.func @transform_0(%arg0: i32, %arg1: i32) -> (i32, i32) {
    %c1_i32 = arith.constant 1 : i32
    %0 = arith.muli %arg0, %c1_i32 : i32
    %1 = arith.addi %0, %arg1 : i32
    %c0_i32 = arith.constant 0 : i32
    %c0_i32_0 = arith.constant 0 : i32
    return %1, %c0_i32 : i32, i32
  }
  func.func @transform_1(%arg0: i32, %arg1: i32) -> (i32, i32) {
    %c0_i32 = arith.constant 0 : i32
    %c0_i32_0 = arith.constant 0 : i32
    %c0_i32_1 = arith.constant 0 : i32
    return %c0_i32, %c0_i32_0 : i32, i32
  }
  func.func @transform_2(%arg0: i32, %arg1: i32) -> (i32, i32) {
    %c1_i32 = arith.constant 1 : i32
    %0 = arith.muli %arg0, %c1_i32 : i32
    %1 = arith.addi %0, %arg1 : i32
    %c0_i32 = arith.constant 0 : i32
    %c0_i32_0 = arith.constant 0 : i32
    return %1, %c0_i32 : i32, i32
  }
  func.func @transform_3(%arg0: i32, %arg1: i32) -> (i32, i32) {
    %c0_i32 = arith.constant 0 : i32
    %c0_i32_0 = arith.constant 0 : i32
    %c0_i32_1 = arith.constant 0 : i32
    return %c0_i32, %c0_i32_0 : i32, i32
  }
  func.func @transform_4(%arg0: i32, %arg1: i32) -> (i32, i32) {
    %c1_i32 = arith.constant 1 : i32
    %0 = arith.muli %arg0, %c1_i32 : i32
    %1 = arith.addi %0, %arg1 : i32
    %c0_i32 = arith.constant 0 : i32
    %c0_i32_0 = arith.constant 0 : i32
    return %1, %c0_i32 : i32, i32
  }
  func.func @transform_5(%arg0: i32, %arg1: i32) -> (i32, i32) {
    %c1_i32 = arith.constant 1 : i32
    %0 = arith.muli %arg0, %c1_i32 : i32
    %1 = arith.addi %0, %arg1 : i32
    %c0_i32 = arith.constant 0 : i32
    %c0_i32_0 = arith.constant 0 : i32
    return %1, %c0_i32 : i32, i32
  }
  func.func @transform_6(%arg0: i32, %arg1: i32) -> (i32, i32) {
    %c0_i32 = arith.constant 0 : i32
    %c0_i32_0 = arith.constant 0 : i32
    return %arg0, %c0_i32 : i32, i32
  }
}

module attributes {stable_mosaic.version = 11 : i64} {
  func.func @_bn_proj_add_relu_kernel(%arg0: i32, %arg1: memref<128x128xbf16, #tpu.memory_space<vmem>>, %arg2: memref<128x128xbf16, #tpu.memory_space<vmem>>, %arg3: memref<8x128xf32, #tpu.memory_space<vmem>>, %arg4: memref<1x128xf32, #tpu.memory_space<vmem>>, %arg5: memref<1x128xf32, #tpu.memory_space<vmem>>, %arg6: memref<1x128xf32, #tpu.memory_space<vmem>>, %arg7: memref<1x128xf32, #tpu.memory_space<vmem>>, %arg8: memref<128x128xf32, #tpu.memory_space<vmem>>) attributes {dimension_semantics = [#tpu.dimension_semantics<parallel>], iteration_bounds = array<i64: 1>, scalar_prefetch = 0 : i64, scratch_operands = 0 : i64, tpu.core_type = #tpu.core_type<tc>, window_params = [{transform_indices = @transform_0, window_bounds = array<i64: 128, 128>}, {transform_indices = @transform_1, window_bounds = array<i64: 128, 128>}, {pipeline_mode = #tpu.pipeline_mode<synchronous>, transform_indices = @transform_2, window_bounds = array<i64: 8, 128>}, {pipeline_mode = #tpu.pipeline_mode<synchronous>, transform_indices = @transform_3, window_bounds = array<i64: 1, 128>}, {pipeline_mode = #tpu.pipeline_mode<synchronous>, transform_indices = @transform_4, window_bounds = array<i64: 1, 128>}, {pipeline_mode = #tpu.pipeline_mode<synchronous>, transform_indices = @transform_5, window_bounds = array<i64: 1, 128>}, {pipeline_mode = #tpu.pipeline_mode<synchronous>, transform_indices = @transform_6, window_bounds = array<i64: 1, 128>}, {transform_indices = @transform_7, window_bounds = array<i64: 128, 128>}]} {
    %c0 = arith.constant 0 : index
    %c0_0 = arith.constant 0 : index
    %0 = vector.load %arg3[%c0, %c0_0] : memref<8x128xf32, #tpu.memory_space<vmem>>, vector<8x128xf32>
    %1 = vector.extract_strided_slice %0 {offsets = [0, 0], sizes = [1, 128], strides = [1, 1]} : vector<8x128xf32> to vector<1x128xf32>
    %cst = arith.constant 7.812500e-03 : f32
    %2 = vector.broadcast %cst : f32 to vector<1x128xf32>
    %3 = arith.mulf %1, %2 : vector<1x128xf32>
    %4 = vector.extract_strided_slice %0 {offsets = [1, 0], sizes = [1, 128], strides = [1, 1]} : vector<8x128xf32> to vector<1x128xf32>
    %cst_1 = arith.constant 7.812500e-03 : f32
    %5 = vector.broadcast %cst_1 : f32 to vector<1x128xf32>
    %6 = arith.mulf %4, %5 : vector<1x128xf32>
    %7 = arith.mulf %3, %3 : vector<1x128xf32>
    %8 = arith.subf %6, %7 : vector<1x128xf32>
    %cst_2 = arith.constant 0.000000e+00 : f32
    %9 = vector.broadcast %cst_2 : f32 to vector<1x128xf32>
    %10 = arith.maximumf %8, %9 : vector<1x128xf32>
    %11 = vector.extract_strided_slice %0 {offsets = [2, 0], sizes = [1, 128], strides = [1, 1]} : vector<8x128xf32> to vector<1x128xf32>
    %cst_3 = arith.constant 7.812500e-03 : f32
    %12 = vector.broadcast %cst_3 : f32 to vector<1x128xf32>
    %13 = arith.mulf %11, %12 : vector<1x128xf32>
    %14 = vector.extract_strided_slice %0 {offsets = [3, 0], sizes = [1, 128], strides = [1, 1]} : vector<8x128xf32> to vector<1x128xf32>
    %cst_4 = arith.constant 7.812500e-03 : f32
    %15 = vector.broadcast %cst_4 : f32 to vector<1x128xf32>
    %16 = arith.mulf %14, %15 : vector<1x128xf32>
    %17 = arith.mulf %13, %13 : vector<1x128xf32>
    %18 = arith.subf %16, %17 : vector<1x128xf32>
    %cst_5 = arith.constant 0.000000e+00 : f32
    %19 = vector.broadcast %cst_5 : f32 to vector<1x128xf32>
    %20 = arith.maximumf %18, %19 : vector<1x128xf32>
    %c0_6 = arith.constant 0 : index
    %c0_7 = arith.constant 0 : index
    %21 = vector.load %arg1[%c0_6, %c0_7] : memref<128x128xbf16, #tpu.memory_space<vmem>>, vector<128x128xbf16>
    %22 = arith.extf %21 : vector<128x128xbf16> to vector<128x128xf32>
    %23 = vector.broadcast %3 : vector<1x128xf32> to vector<128x128xf32>
    %24 = arith.subf %22, %23 : vector<128x128xf32>
    %c0_8 = arith.constant 0 : index
    %c0_9 = arith.constant 0 : index
    %25 = vector.load %arg4[%c0_8, %c0_9] : memref<1x128xf32, #tpu.memory_space<vmem>>, vector<1x128xf32>
    %cst_10 = arith.constant 9.99999974E-6 : f32
    %26 = vector.broadcast %cst_10 : f32 to vector<1x128xf32>
    %27 = arith.addf %10, %26 : vector<1x128xf32>
    %28 = math.rsqrt %27 : vector<1x128xf32>
    %29 = arith.mulf %25, %28 : vector<1x128xf32>
    %30 = vector.broadcast %29 : vector<1x128xf32> to vector<128x128xf32>
    %31 = arith.mulf %24, %30 : vector<128x128xf32>
    %c0_11 = arith.constant 0 : index
    %c0_12 = arith.constant 0 : index
    %32 = vector.load %arg5[%c0_11, %c0_12] : memref<1x128xf32, #tpu.memory_space<vmem>>, vector<1x128xf32>
    %33 = vector.broadcast %32 : vector<1x128xf32> to vector<128x128xf32>
    %34 = arith.addf %31, %33 : vector<128x128xf32>
    %c0_13 = arith.constant 0 : index
    %c0_14 = arith.constant 0 : index
    %35 = vector.load %arg2[%c0_13, %c0_14] : memref<128x128xbf16, #tpu.memory_space<vmem>>, vector<128x128xbf16>
    %36 = arith.extf %35 : vector<128x128xbf16> to vector<128x128xf32>
    %37 = vector.broadcast %13 : vector<1x128xf32> to vector<128x128xf32>
    %38 = arith.subf %36, %37 : vector<128x128xf32>
    %c0_15 = arith.constant 0 : index
    %c0_16 = arith.constant 0 : index
    %39 = vector.load %arg6[%c0_15, %c0_16] : memref<1x128xf32, #tpu.memory_space<vmem>>, vector<1x128xf32>
    %cst_17 = arith.constant 9.99999974E-6 : f32
    %40 = vector.broadcast %cst_17 : f32 to vector<1x128xf32>
    %41 = arith.addf %20, %40 : vector<1x128xf32>
    %42 = math.rsqrt %41 : vector<1x128xf32>
    %43 = arith.mulf %39, %42 : vector<1x128xf32>
    %44 = vector.broadcast %43 : vector<1x128xf32> to vector<128x128xf32>
    %45 = arith.mulf %38, %44 : vector<128x128xf32>
    %c0_18 = arith.constant 0 : index
    %c0_19 = arith.constant 0 : index
    %46 = vector.load %arg7[%c0_18, %c0_19] : memref<1x128xf32, #tpu.memory_space<vmem>>, vector<1x128xf32>
    %47 = vector.broadcast %46 : vector<1x128xf32> to vector<128x128xf32>
    %48 = arith.addf %45, %47 : vector<128x128xf32>
    %49 = arith.addf %34, %48 : vector<128x128xf32>
    %cst_20 = arith.constant 0.000000e+00 : f32
    %50 = vector.broadcast %cst_20 : f32 to vector<128x128xf32>
    %51 = arith.maximumf %49, %50 : vector<128x128xf32>
    %c0_21 = arith.constant 0 : index
    %c0_22 = arith.constant 0 : index
    %52 = vector.load %arg8[%c0_21, %c0_22] : memref<128x128xf32, #tpu.memory_space<vmem>>, vector<128x128xf32>
    tpu.vector_store %arg8[%c0_21, %c0_22], %51 {strides = array<i32>} : memref<128x128xf32, #tpu.memory_space<vmem>>, vector<128x128xf32>,
    return
  }
  func.func @transform_0(%arg0: i32) -> (i32, i32) {
    %c0_i32 = arith.constant 0 : i32
    %c0_i32_0 = arith.constant 0 : i32
    return %arg0, %c0_i32 : i32, i32
  }
  func.func @transform_1(%arg0: i32) -> (i32, i32) {
    %c0_i32 = arith.constant 0 : i32
    %c0_i32_0 = arith.constant 0 : i32
    return %arg0, %c0_i32 : i32, i32
  }
  func.func @transform_2(%arg0: i32) -> (i32, i32) {
    %c0_i32 = arith.constant 0 : i32
    %c0_i32_0 = arith.constant 0 : i32
    %c0_i32_1 = arith.constant 0 : i32
    return %c0_i32, %c0_i32_0 : i32, i32
  }
  func.func @transform_3(%arg0: i32) -> (i32, i32) {
    %c0_i32 = arith.constant 0 : i32
    %c0_i32_0 = arith.constant 0 : i32
    %c0_i32_1 = arith.constant 0 : i32
    return %c0_i32, %c0_i32_0 : i32, i32
  }
  func.func @transform_4(%arg0: i32) -> (i32, i32) {
    %c0_i32 = arith.constant 0 : i32
    %c0_i32_0 = arith.constant 0 : i32
    %c0_i32_1 = arith.constant 0 : i32
    return %c0_i32, %c0_i32_0 : i32, i32
  }
  func.func @transform_5(%arg0: i32) -> (i32, i32) {
    %c0_i32 = arith.constant 0 : i32
    %c0_i32_0 = arith.constant 0 : i32
    %c0_i32_1 = arith.constant 0 : i32
    return %c0_i32, %c0_i32_0 : i32, i32
  }
  func.func @transform_6(%arg0: i32) -> (i32, i32) {
    %c0_i32 = arith.constant 0 : i32
    %c0_i32_0 = arith.constant 0 : i32
    %c0_i32_1 = arith.constant 0 : i32
    return %c0_i32, %c0_i32_0 : i32, i32
  }
  func.func @transform_7(%arg0: i32) -> (i32, i32) {
    %c0_i32 = arith.constant 0 : i32
    %c0_i32_0 = arith.constant 0 : i32
    return %arg0, %c0_i32 : i32, i32
  }
}

</mosaic_0001>

<bundles_post_ra>
// kernel: basic_block_forward.5
= control target key start
LH: loop header
LB: loop body
LE: loop exit
PB: predicated region body
PF: predicated region fallthrough
CT: control target
= control target key end

     0   :  { %v57_v7 = vlaneseq  ;;  %v365_v8 = vmov 1966171168   ;;  %s448_s1 = inlined_call_operand.vmem [shape: f32[8,128], index: 1, kind: input, shape index: {}]   ;;  %s449_s0 = inlined_call_operand.vmem [shape: bf16[128,128], index: 0, kind: input, shape index: {}]   ;;  %s450_s2 = inlined_call_operand.vmem [shape: f32[1,128], index: 2, kind: input, shape index: {}]   ;;  %s451_s3 = inlined_call_operand.vmem [shape: f32[1,128], index: 3, kind: input, shape index: {}]   ;;  %s452_s4 = inlined_call_operand.vmem [shape: bf16[128,128], index: 4, kind: output, shape index: {}]  }
   0x1   :  { %v17_v0 = vld [vmem:[%s448_s1] sm:$0xff]  ;;  %v82_v9 = vunpack.c.l.s4 %v365_v8  ;;  %v348_v15 = vld [vmem:[%s449_s0 + $0x8] sm:$0xff]   ;;  %v349_v17 = vld [vmem:[%s449_s0 + $0x10] sm:$0xff]  }
   0x2   :  { %v18_v1 = vmul.f32 0.0078125, %v17_v0  ;;  %v58_v10 = vshrl.u32 %v57_v7, 7  ;;  %v277_v13 = vld [vmem:[%s449_s0] sm:$0xff]   ;;  %v350_v18 = vld [vmem:[%s449_s0 + $0x18] sm:$0xff]   ;;  %v352_v22 = vld [vmem:[%s449_s0 + $0x28] sm:$0xff]   ;;  %v282_v25 = vunpack.c.l.bf16 %v348_v15  ;;  %v283_v26 = vunpack.c.h.bf16 %v348_v15 }
   0x3   :  { %v83_v11 = vunpack.c.0.s8 %v82_v9  ;;  %v278_v19 = vunpack.c.l.bf16 %v277_v13  ;;  %v351_v21 = vld [vmem:[%s449_s0 + $0x20] sm:$0xff]   ;;  %v279_v23 = vunpack.c.h.bf16 %v277_v13  ;;  %v353_v27 = vld [vmem:[%s449_s0 + $0x30] sm:$0xff]   ;;  %v286_v29 = vunpack.c.l.bf16 %v349_v17  ;;  %v354_v32 = vld [vmem:[%s449_s0 + $0x38] sm:$0xff]  }
   0x4   :  { %v19_v2 = vmul.f32 %v18_v1, %v18_v1  ;;  %v59_v14 = vsub.s32 0, %v58_v10  ;;  %v287_v30 = vunpack.c.h.bf16 %v349_v17  ;;  %v290_v31 = vunpack.c.l.bf16 %v350_v18  ;;  %v77_v33 = vld [vmem:[%s450_s2] sm:$0x1] }
   0x5   :  { %v86_v12 = vsub.s32 %v83_v11, %v58_v10  ;;  %v291_v34 = vunpack.c.h.bf16 %v350_v18  ;;  %v294_v35 = vunpack.c.l.bf16 %v351_v21  ;;  %v295_v36 = vunpack.c.h.bf16 %v351_v21  ;;  %v243_v58 = vld [vmem:[%s451_s3] ss:$0 sm:$0xff] }
   0x6   :  { %v21_v3 = vrot.slane %v19_v2, 7  ;;  %v60_v24 = vrot.slane %v18_v1, %v59_v14  ;;  %v298_v37 = vunpack.c.l.bf16 %v352_v22  ;;  %v299_v39 = vunpack.c.h.bf16 %v352_v22 }
   0x7   :  { %v302_v40 = vunpack.c.l.bf16 %v353_v27  ;;  %v303_v41 = vunpack.c.h.bf16 %v353_v27  ;;  %v306_v44 = vunpack.c.l.bf16 %v354_v32  ;;  %v307_v45 = vunpack.c.h.bf16 %v354_v32 }
   0x8   :  { %v23_v4 = vsub.f32 %v18_v1, %v21_v3  ;;  %v61_v42 = vsub.f32 %v278_v19, %v60_v24  ;;  %v62_v43 = vsub.f32 %v279_v23, %v60_v24  ;;  %v63_v47 = vsub.f32 %v282_v25, %v60_v24 }
   0x9   :  { %v64_v48 = vsub.f32 %v283_v26, %v60_v24  ;;  %v65_v49 = vsub.f32 %v286_v29, %v60_v24  ;;  %v66_v50 = vsub.f32 %v287_v30, %v60_v24  ;;  %v67_v51 = vsub.f32 %v290_v31, %v60_v24 }
   0xa   :  { %v24_v5 = vmax.f32 %v23_v4, 0.0  ;;  %v68_v52 = vsub.f32 %v291_v34, %v60_v24  ;;  %v69_v53 = vsub.f32 %v294_v35, %v60_v24  ;;  %v70_v55 = vsub.f32 %v295_v36, %v60_v24 }
   0xb   :  { %v71_v56 = vsub.f32 %v298_v37, %v60_v24  ;;  %v72_v57 = vsub.f32 %v299_v39, %v60_v24  ;;  %v73_v59 = vsub.f32 %v302_v40, %v60_v24  ;;  %v74_v60 = vsub.f32 %v303_v41, %v60_v24 }
   0xc   :  { %v78_v6 = vadd.f32 1e-05, %v24_v5  ;;  %v75_v61 = vsub.f32 %v306_v44, %v60_v24  ;;  %v76_v62 = vsub.f32 %v307_v45, %v60_v24 }
   0xe   :  { %363 = vrsqrt.f32 %v78_v6 }
  0x18   :  { %v364_v16 = vpop.eup %363 }
  0x19   :  { %v87_v20 = vrot.slane %v364_v16, %v86_v12 }
  0x1b   :  { %v88_v28 = vcombine.high %v87_v20, %v87_v20 }
  0x1d   :  { %v95_v38 = vrot.slane %v88_v28, %v86_v12 }
  0x1f   :  { %v97_v46 = vmul.f32 %v95_v38, %v77_v33 }
  0x21   :  { %v102_v54 = vrot.slane %v97_v46, %v59_v14 }
  0x23   :  { %v104_v63 = vmul.f32 %v102_v54, %v61_v42  ;;  %v105_v0 = vmul.f32 %v102_v54, %v62_v43  ;;  %v106_v1 = vmul.f32 %v102_v54, %v63_v47  ;;  %v107_v2 = vmul.f32 %v102_v54, %v64_v48 }
  0x24   :  { %v108_v3 = vmul.f32 %v102_v54, %v65_v49  ;;  %v109_v4 = vmul.f32 %v102_v54, %v66_v50  ;;  %v110_v5 = vmul.f32 %v102_v54, %v67_v51  ;;  %v111_v6 = vmul.f32 %v102_v54, %v68_v52 }
  0x25   :  { %v127_v7 = vadd.f32 %v243_v58, %v104_v63  ;;  %v128_v8 = vadd.f32 %v243_v58, %v105_v0  ;;  %v129_v9 = vadd.f32 %v243_v58, %v106_v1  ;;  %v130_v10 = vadd.f32 %v243_v58, %v107_v2 }
  0x26   :  { %v131_v11 = vadd.f32 %v243_v58, %v108_v3  ;;  %v132_v12 = vadd.f32 %v243_v58, %v109_v4  ;;  %v133_v13 = vadd.f32 %v243_v58, %v110_v5  ;;  %v134_v14 = vadd.f32 %v243_v58, %v111_v6 }
  0x27   :  { %v143_v15 = vmax.f32 %v127_v7, 0.0  ;;  %v144_v16 = vmax.f32 %v128_v8, 0.0  ;;  %v145_v17 = vmax.f32 %v129_v9, 0.0  ;;  %v146_v18 = vmax.f32 %v130_v10, 0.0 }
  0x28   :  { %v147_v19 = vmax.f32 %v131_v11, 0.0  ;;  %v148_v20 = vmax.f32 %v132_v12, 0.0  ;;  %v149_v21 = vmax.f32 %v133_v13, 0.0  ;;  %v150_v22 = vmax.f32 %v134_v14, 0.0 }
  0x29   :  { %v311_v23 = vpack.c.bf16 %v144_v16, %v143_v15  ;;  %v316_v24 = vpack.c.bf16 %v146_v18, %v145_v17  ;;  %v112_v25 = vmul.f32 %v102_v54, %v69_v53  ;;  %v113_v26 = vmul.f32 %v102_v54, %v70_v55 }
  0x2a   :  { %v321_v27 = vpack.c.bf16 %v148_v20, %v147_v19  ;;  %v326_v28 = vpack.c.bf16 %v150_v22, %v149_v21  ;;  %v114_v29 = vmul.f32 %v102_v54, %v71_v56  ;;  %v115_v30 = vmul.f32 %v102_v54, %v72_v57 }
  0x2b   :  { %312 = vst [vmem:[%s452_s4] sm:$0xff] %v311_v23   ;;  %355 = vst [vmem:[%s452_s4 + $0x8] sm:$0xff] %v316_v24   ;;  %v135_v31 = vadd.f32 %v243_v58, %v112_v25  ;;  %v136_v32 = vadd.f32 %v243_v58, %v113_v26  ;;  %v116_v33 = vmul.f32 %v102_v54, %v73_v59 }
  0x2c   :  { %v117_v34 = vmul.f32 %v102_v54, %v74_v60  ;;  %356 = vst [vmem:[%s452_s4 + $0x10] sm:$0xff] %v321_v27   ;;  %357 = vst [vmem:[%s452_s4 + $0x18] sm:$0xff] %v326_v28   ;;  %v137_v35 = vadd.f32 %v243_v58, %v114_v29  ;;  %v138_v36 = vadd.f32 %v243_v58, %v115_v30 }
  0x2d   :  { %v118_v37 = vmul.f32 %v102_v54, %v75_v61  ;;  %v119_v38 = vmul.f32 %v102_v54, %v76_v62  ;;  %v151_v39 = vmax.f32 %v135_v31, 0.0  ;;  %v152_v40 = vmax.f32 %v136_v32, 0.0 }
  0x2e   :  { %v139_v41 = vadd.f32 %v243_v58, %v116_v33  ;;  %v140_v42 = vadd.f32 %v243_v58, %v117_v34  ;;  %v153_v43 = vmax.f32 %v137_v35, 0.0  ;;  %v154_v44 = vmax.f32 %v138_v36, 0.0 }
  0x2f   :  { %v141_v45 = vadd.f32 %v243_v58, %v118_v37  ;;  %v142_v46 = vadd.f32 %v243_v58, %v119_v38  ;;  %v331_v47 = vpack.c.bf16 %v152_v40, %v151_v39 }
  0x30   :  { %v155_v48 = vmax.f32 %v139_v41, 0.0  ;;  %v156_v49 = vmax.f32 %v140_v42, 0.0  ;;  %v336_v50 = vpack.c.bf16 %v154_v44, %v153_v43 }
  0x31   :  { %v157_v51 = vmax.f32 %v141_v45, 0.0  ;;  %v158_v52 = vmax.f32 %v142_v46, 0.0  ;;  %358 = vst [vmem:[%s452_s4 + $0x20] sm:$0xff] %v331_v47  }
  0x32   :  { %v341_v53 = vpack.c.bf16 %v156_v49, %v155_v48  ;;  %359 = vst [vmem:[%s452_s4 + $0x28] sm:$0xff] %v336_v50  }
  0x33   :  { %v346_v54 = vpack.c.bf16 %v158_v52, %v157_v51 }
  0x34   :  { %360 = vst [vmem:[%s452_s4 + $0x30] sm:$0xff] %v341_v53  }
  0x35   :  { %361 = vst [vmem:[%s452_s4 + $0x38] sm:$0xff] %v346_v54  }

// kernel: basic_block_forward.4
= control target key start
LH: loop header
LB: loop body
LE: loop exit
PB: predicated region body
PF: predicated region fallthrough
CT: control target
= control target key end

     0   :  { %v636_v16 = vmov 0.0   ;;  %s744_s1 = inlined_call_operand.vmem [shape: bf16[128,128], index: 1, kind: input, shape index: {}]   ;;  %s745_s0 = inlined_call_operand.vmem [shape: bf16[128,128], index: 0, kind: input, shape index: {}]   ;;  %s746_s3 = inlined_call_operand.vmem [shape: f32[8,128], index: 3, kind: output, shape index: {1}]   ;;  %s747_s2 = inlined_call_operand.vmem [shape: bf16[128,128], index: 2, kind: output, shape index: {0}]  }
   0x1   :  { %v620_v0 = vld [vmem:[%s744_s1] sm:$0xff]   ;;  %v621_v1 = vld [vmem:[%s744_s1 + $0x8] sm:$0xff]   ;;  %v622_v2 = vld [vmem:[%s744_s1 + $0x10] sm:$0xff]   ;;  %54 = vst [vmem:[%s746_s3] sm:$0xff] %v636_v16 }
   0x2   :  { %571 = vmatprep.subr.bf16.mxu0 %v620_v0  ;;  %603 = vmatprep.subr.bf16.mxu1 %v620_v0  ;;  %v623_v3 = vld [vmem:[%s744_s1 + $0x18] sm:$0xff]   ;;  %v628_v4 = vld [vmem:[%s745_s0] sm:$0xff]   ;;  %v625_v7 = vld [vmem:[%s744_s1 + $0x28] sm:$0xff]  }
   0x3   :  { %572 = vmatpush3.bf16.msra.mxu0 %v620_v0  ;;  %611 = vmatpush3.bf16.msra.mxu1 %v620_v0  ;;  %v624_v5 = vld [vmem:[%s744_s1 + $0x20] sm:$0xff]   ;;  %v626_v8 = vld [vmem:[%s744_s1 + $0x30] sm:$0xff]   ;;  %v627_v9 = vld [vmem:[%s744_s1 + $0x38] sm:$0xff]  }
   0x4   :  { %573 = vmatprep.subr.bf16.mxu0 %v621_v1  ;;  %604 = vmatprep.subr.bf16.mxu1 %v621_v1  ;;  %v632_v6 = vld [vmem:[%s745_s0 + $0x20] sm:$0xff]   ;;  %v629_v10 = vld [vmem:[%s745_s0 + $0x8] sm:$0xff]   ;;  %v630_v12 = vld [vmem:[%s745_s0 + $0x10] sm:$0xff]  }
   0x5   :  { %587 = vmatprep.mubr.bf16.mxu0 %v628_v4  ;;  %595 = vmatprep.mubr.bf16.mxu1 %v632_v6  ;;  %v633_v11 = vld [vmem:[%s745_s0 + $0x28] sm:$0xff]   ;;  %v634_v13 = vld [vmem:[%s745_s0 + $0x30] sm:$0xff]   ;;  %v631_v14 = vld [vmem:[%s745_s0 + $0x18] sm:$0xff]  }
   0x6   :  { %v635_v15 = vld [vmem:[%s745_s0 + $0x38] sm:$0xff]  }
   0x7   :  { %574 = vmatpush3.bf16.msra.mxu0 %v621_v1  ;;  %612 = vmatpush3.bf16.msra.mxu1 %v621_v1 }
   0x8   :  { %575 = vmatprep.subr.bf16.mxu0 %v622_v2  ;;  %605 = vmatprep.subr.bf16.mxu1 %v622_v2 }
   0xb   :  { %576 = vmatpush3.bf16.msra.mxu0 %v622_v2  ;;  %613 = vmatpush3.bf16.msra.mxu1 %v622_v2 }
   0xc   :  { %577 = vmatprep.subr.bf16.mxu0 %v623_v3  ;;  %606 = vmatprep.subr.bf16.mxu1 %v623_v3 }
   0xf   :  { %578 = vmatpush3.bf16.msra.mxu0 %v623_v3  ;;  %614 = vmatpush3.bf16.msra.mxu1 %v623_v3 }
  0x10   :  { %579 = vmatprep.subr.bf16.mxu0 %v624_v5  ;;  %607 = vmatprep.subr.bf16.mxu1 %v624_v5 }
  0x13   :  { %580 = vmatpush3.bf16.msra.mxu0 %v624_v5  ;;  %615 = vmatpush3.bf16.msra.mxu1 %v624_v5 }
  0x14   :  { %581 = vmatprep.subr.bf16.mxu0 %v625_v7  ;;  %608 = vmatprep.subr.bf16.mxu1 %v625_v7 }
  0x17   :  { %582 = vmatpush3.bf16.msra.mxu0 %v625_v7  ;;  %616 = vmatpush3.bf16.msra.mxu1 %v625_v7 }
  0x18   :  { %583 = vmatprep.subr.bf16.mxu0 %v626_v8  ;;  %609 = vmatprep.subr.bf16.mxu1 %v626_v8 }
  0x1b   :  { %584 = vmatpush3.bf16.msra.mxu0 %v626_v8  ;;  %617 = vmatpush3.bf16.msra.mxu1 %v626_v8 }
  0x1c   :  { %585 = vmatprep.subr.bf16.mxu0 %v627_v9  ;;  %610 = vmatprep.subr.bf16.mxu1 %v627_v9 }
  0x1f   :  { %586 = vmatpush3.bf16.msra.mxu0 %v627_v9  ;;  %618 = vmatpush3.bf16.msra.mxu1 %v627_v9 }
  0x22   :  { %588 = vmatmul.mubr.bf16.vlgmr.msra.gmra.mrb[0].mxu0 %v629_v10  ;;  %596 = vmatmul.mubr.bf16.vlgmr.msra.gmra.mrb[0].mxu1 %v633_v11 }
  0x23   :  { %591 = vmatprep.mubr.bf16.mxu0 %v630_v12  ;;  %599 = vmatprep.mubr.bf16.mxu1 %v634_v13 }
  0x2a   :  { %592 = vmatmul.mubr.bf16.gmra.mrb[4].mxu0 %v631_v14  ;;  %600 = vmatmul.mubr.bf16.gmra.mrb[4].mxu1 %v635_v15 }
  0xf5   :  { %v589_v17 = vpop.f32.mrb[0].mxu0  ;;  %v597_v18 = vpop.f32.mrb[0].mxu1 }
  0xf6   :  { %v217_v19 = vpop.f32.mrb[1].mxu0  ;;  %v249_v20 = vpop.f32.mrb[1].mxu1  ;;  %v387_v32 = vmul.f32 %v589_v17, %v589_v17  ;;  %v395_v4 = vmul.f32 %v597_v18, %v597_v18 }
  0xf7   :  { %v590_v21 = vpop.f32.mrb[2].mxu0  ;;  %v598_v22 = vpop.f32.mrb[2].mxu1  ;;  %v385_v23 = vmul.f32 %v217_v19, %v217_v19  ;;  %v393_v62 = vmul.f32 %v249_v20, %v249_v20 }
  0xf8   :  { %v516_v24 = vpack.c.bf16 %v590_v21, %v589_v17  ;;  %v220_v25 = vpop.f32.mrb[3].mxu0  ;;  %v536_v26 = vpack.c.bf16 %v598_v22, %v597_v18  ;;  %v252_v27 = vpop.f32.mrb[3].mxu1  ;;  %v388_v35 = vmul.f32 %v590_v21, %v590_v21  ;;  %v396_v7 = vmul.f32 %v598_v22, %v598_v22 }
  0xf9   :  { %v511_v28 = vpack.c.bf16 %v220_v25, %v217_v19  ;;  %v361_v29 = vadd.f32 %v220_v25, %v217_v19  ;;  %v386_v30 = vmul.f32 %v220_v25, %v220_v25  ;;  %v531_v31 = vpack.c.bf16 %v252_v27, %v249_v20 }
  0xfa   :  { %548 = vst [vmem:[%s747_s2 + $0x8] sm:$0xff] %v516_v24   ;;  %552 = vst [vmem:[%s747_s2 + $0x28] sm:$0xff] %v536_v26   ;;  %v394_v3 = vmul.f32 %v252_v27, %v252_v27 }
  0xfb   :  { %512 = vst [vmem:[%s747_s2] sm:$0xff] %v511_v28   ;;  %v362_v33 = vadd.f32 %v589_v17, %v361_v29  ;;  %v401_v34 = vadd.f32 %v386_v30, %v385_v23  ;;  %551 = vst [vmem:[%s747_s2 + $0x20] sm:$0xff] %v531_v31  }
  0xfd   :  { %v402_v36 = vadd.f32 %v401_v34, %v387_v32  ;;  %v593_v37 = vpop.f32.mrb[4].mxu0  ;;  %v363_v38 = vadd.f32 %v590_v21, %v362_v33  ;;  %v601_v39 = vpop.f32.mrb[4].mxu1  ;;  %v360_v32 = vld [vmem:[%s746_s3] sm:$0x1] }
  0xfe   :  { %v233_v40 = vpop.f32.mrb[5].mxu0  ;;  %v265_v41 = vpop.f32.mrb[5].mxu1  ;;  %v391_v56 = vmul.f32 %v593_v37, %v593_v37  ;;  %v399_v16 = vmul.f32 %v601_v39, %v601_v39 }
  0xff   :  { %v364_v42 = vadd.f32 %v363_v38, %v233_v40  ;;  %v389_v43 = vmul.f32 %v233_v40, %v233_v40  ;;  %v403_v44 = vadd.f32 %v402_v36, %v388_v35  ;;  %v594_v45 = vpop.f32.mrb[6].mxu0  ;;  %v602_v46 = vpop.f32.mrb[6].mxu1  ;;  %v397_v10 = vmul.f32 %v265_v41, %v265_v41  ;;  %v384_v35 = vld [vmem:[%s746_s3 + $0x1] sm:$0x1] }
 0x100   :  { %v526_v47 = vpack.c.bf16 %v594_v45, %v593_v37  ;;  %v236_v48 = vpop.f32.mrb[7].mxu0  ;;  %v546_v49 = vpack.c.bf16 %v602_v46, %v601_v39  ;;  %v268_v50 = vpop.f32.mrb[7].mxu1  ;;  %v392_v59 = vmul.f32 %v594_v45, %v594_v45 }
 0x101   :  { %v404_v51 = vadd.f32 %v403_v44, %v389_v43  ;;  %v521_v52 = vpack.c.bf16 %v236_v48, %v233_v40  ;;  %v365_v53 = vadd.f32 %v364_v42, %v236_v48  ;;  %v390_v54 = vmul.f32 %v236_v48, %v236_v48 }
 0x102   :  { %550 = vst [vmem:[%s747_s2 + $0x18] sm:$0xff] %v526_v47   ;;  %554 = vst [vmem:[%s747_s2 + $0x38] sm:$0xff] %v546_v49   ;;  %v541_v55 = vpack.c.bf16 %v268_v50, %v265_v41  ;;  %v398_v15 = vmul.f32 %v268_v50, %v268_v50 }
 0x103   :  { %549 = vst [vmem:[%s747_s2 + $0x10] sm:$0xff] %v521_v52   ;;  %v366_v57 = vadd.f32 %v593_v37, %v365_v53  ;;  %v405_v58 = vadd.f32 %v404_v51, %v390_v54 }
 0x104   :  { %553 = vst [vmem:[%s747_s2 + $0x30] sm:$0xff] %v541_v55  }
 0x105   :  { %v406_v60 = vadd.f32 %v405_v58, %v391_v56  ;;  %v367_v61 = vadd.f32 %v594_v45, %v366_v57 }
 0x107   :  { %v368_v63 = vadd.f32 %v367_v61, %v249_v20  ;;  %v407_v0 = vadd.f32 %v406_v60, %v392_v59  ;;  %v400_v20 = vmul.f32 %v602_v46, %v602_v46 }
 0x109   :  { %v408_v1 = vadd.f32 %v407_v0, %v393_v62  ;;  %v369_v2 = vadd.f32 %v368_v63, %v252_v27 }
 0x10b   :  { %v370_v5 = vadd.f32 %v597_v18, %v369_v2  ;;  %v409_v6 = vadd.f32 %v408_v1, %v394_v3 }
 0x10d   :  { %v410_v8 = vadd.f32 %v409_v6, %v395_v4  ;;  %v371_v9 = vadd.f32 %v598_v22, %v370_v5 }
 0x10f   :  { %v372_v11 = vadd.f32 %v371_v9, %v265_v41  ;;  %v411_v12 = vadd.f32 %v410_v8, %v396_v7 }
 0x111   :  { %v412_v13 = vadd.f32 %v411_v12, %v397_v10  ;;  %v373_v14 = vadd.f32 %v372_v11, %v268_v50 }
 0x113   :  { %v374_v17 = vadd.f32 %v601_v39, %v373_v14  ;;  %v413_v19 = vadd.f32 %v412_v13, %v398_v15 }
 0x115   :  { %v375_v21 = vadd.f32 %v602_v46, %v374_v17  ;;  %v414_v23 = vadd.f32 %v413_v19, %v399_v16 }
 0x117   :  { %v376_v24 = vrot.slane %v375_v21, 4  ;;  %v415_v25 = vadd.f32 %v414_v23, %v400_v20 }
 0x119   :  { %v377_v26 = vadd.f32 %v376_v24, %v375_v21  ;;  %v416_v18 = vrot.slane %v415_v25, 4 }
 0x11b   :  { %v378_v27 = vrot.slane %v377_v26, 2  ;;  %v417_v28 = vadd.f32 %v416_v18, %v415_v25 }
 0x11d   :  { %v379_v29 = vadd.f32 %v378_v27, %v377_v26  ;;  %v418_v22 = vrot.slane %v417_v28, 2 }
 0x11f   :  { %v380_v30 = vrot.slane %v379_v29, 1  ;;  %v419_v31 = vadd.f32 %v418_v22, %v417_v28 }
 0x121   :  { %v381_v33 = vadd.f32 %v380_v30, %v379_v29  ;;  %v420_v34 = vrot.slane %v419_v31, 1 }
 0x123   :  { %v382_v36 = vadd.f32 %v381_v33, %v360_v32  ;;  %v421_v37 = vadd.f32 %v420_v34, %v419_v31 }
 0x125   :  { %383 = vst [vmem:[%s746_s3] sm:$0x1] %v382_v36  ;;  %v422_v38 = vadd.f32 %v421_v37, %v384_v35 }
 0x127   :  { %423 = vst [vmem:[%s746_s3 + $0x1] sm:$0x1] %v422_v38 }

// kernel: basic_block_forward.6
= control target key start
LH: loop header
LB: loop body
LE: loop exit
PB: predicated region body
PF: predicated region fallthrough
CT: control target
= control target key end

     0   :  { %v1223_v32 = vmov 0.0   ;;  %s1430_s1 = inlined_call_operand.vmem [shape: bf16[128,128], index: 1, kind: input, shape index: {}]   ;;  %s1431_s3 = inlined_call_operand.vmem [shape: bf16[128,128], index: 3, kind: input, shape index: {}]   ;;  %s1432_s0 = inlined_call_operand.vmem [shape: bf16[128,128], index: 0, kind: input, shape index: {}]   ;;  %s1433_s2 = inlined_call_operand.vmem [shape: bf16[128,128], index: 2, kind: input, shape index: {}]   ;;  %s1434_s6 = inlined_call_operand.vmem [shape: f32[8,128], index: 6, kind: output, shape index: {2}]   ;;  %s1435_s4 = inlined_call_operand.vmem [shape: bf16[128,128], index: 4, kind: output, shape index: {0}]   ;;  %s1436_s5 = inlined_call_operand.vmem [shape: bf16[128,128], index: 5, kind: output, shape index: {1}]  }
   0x1   :  { %v1191_v0 = vld [vmem:[%s1430_s1] sm:$0xff]   ;;  %v1193_v2 = vld [vmem:[%s1430_s1 + $0x8] sm:$0xff]   ;;  %v1195_v4 = vld [vmem:[%s1430_s1 + $0x10] sm:$0xff]   ;;  %97 = vst [vmem:[%s1434_s6] sm:$0xff] %v1223_v32 }
   0x2   :  { %v1192_v1 = vld [vmem:[%s1431_s3] sm:$0xff]   ;;  %1126 = vmatprep.subr.bf16.mxu0 %v1191_v0  ;;  %v1194_v3 = vld [vmem:[%s1431_s3 + $0x8] sm:$0xff]   ;;  %v1196_v5 = vld [vmem:[%s1431_s3 + $0x10] sm:$0xff]  }
   0x3   :  { %1158 = vmatprep.subr.bf16.mxu1 %v1192_v1  ;;  %1127 = vmatpush3.bf16.msra.mxu0 %v1191_v0  ;;  %v1197_v6 = vld [vmem:[%s1430_s1 + $0x18] sm:$0xff]   ;;  %v1199_v8 = vld [vmem:[%s1430_s1 + $0x20] sm:$0xff]   ;;  %v1201_v10 = vld [vmem:[%s1430_s1 + $0x28] sm:$0xff]  }
   0x4   :  { %1159 = vmatpush3.bf16.msra.mxu1 %v1192_v1  ;;  %1128 = vmatprep.subr.bf16.mxu0 %v1193_v2  ;;  %v1198_v7 = vld [vmem:[%s1431_s3 + $0x18] sm:$0xff]   ;;  %v1200_v9 = vld [vmem:[%s1431_s3 + $0x20] sm:$0xff]   ;;  %v1202_v11 = vld [vmem:[%s1431_s3 + $0x28] sm:$0xff]  }
   0x5   :  { %1160 = vmatprep.subr.bf16.mxu1 %v1194_v3  ;;  %v1207_v12 = vld [vmem:[%s1432_s0] sm:$0xff]   ;;  %v1203_v14 = vld [vmem:[%s1430_s1 + $0x30] sm:$0xff]   ;;  %v1205_v16 = vld [vmem:[%s1430_s1 + $0x38] sm:$0xff]  }
   0x6   :  { %v1208_v13 = vld [vmem:[%s1433_s2] sm:$0xff]   ;;  %1142 = vmatprep.mubr.bf16.mxu0 %v1207_v12  ;;  %v1204_v15 = vld [vmem:[%s1431_s3 + $0x30] sm:$0xff]   ;;  %v1206_v17 = vld [vmem:[%s1431_s3 + $0x38] sm:$0xff]  }
   0x7   :  { %1129 = vmatpush3.bf16.msra.mxu0 %v1193_v2  ;;  %1174 = vmatprep.mubr.bf16.mxu1 %v1208_v13  ;;  %v1209_v18 = vld [vmem:[%s1432_s0 + $0x8] sm:$0xff]   ;;  %v1211_v20 = vld [vmem:[%s1432_s0 + $0x10] sm:$0xff]   ;;  %v1213_v22 = vld [vmem:[%s1432_s0 + $0x18] sm:$0xff]  }
   0x8   :  { %1161 = vmatpush3.bf16.msra.mxu1 %v1194_v3  ;;  %1130 = vmatprep.subr.bf16.mxu0 %v1195_v4  ;;  %v1210_v19 = vld [vmem:[%s1433_s2 + $0x8] sm:$0xff]   ;;  %v1212_v21 = vld [vmem:[%s1433_s2 + $0x10] sm:$0xff]   ;;  %v1214_v23 = vld [vmem:[%s1433_s2 + $0x18] sm:$0xff]  }
   0x9   :  { %1162 = vmatprep.subr.bf16.mxu1 %v1196_v5  ;;  %v1215_v24 = vld [vmem:[%s1432_s0 + $0x20] sm:$0xff]   ;;  %v1217_v26 = vld [vmem:[%s1432_s0 + $0x28] sm:$0xff]   ;;  %v1219_v28 = vld [vmem:[%s1432_s0 + $0x30] sm:$0xff]  }
   0xa   :  { %v1216_v25 = vld [vmem:[%s1433_s2 + $0x20] sm:$0xff]   ;;  %v1218_v27 = vld [vmem:[%s1433_s2 + $0x28] sm:$0xff]   ;;  %v1220_v29 = vld [vmem:[%s1433_s2 + $0x30] sm:$0xff]  }
   0xb   :  { %1131 = vmatpush3.bf16.msra.mxu0 %v1195_v4  ;;  %v1221_v30 = vld [vmem:[%s1432_s0 + $0x38] sm:$0xff]  }
   0xc   :  { %1163 = vmatpush3.bf16.msra.mxu1 %v1196_v5  ;;  %1132 = vmatprep.subr.bf16.mxu0 %v1197_v6  ;;  %v1222_v31 = vld [vmem:[%s1433_s2 + $0x38] sm:$0xff]  }
   0xd   :  { %1164 = vmatprep.subr.bf16.mxu1 %v1198_v7 }
   0xf   :  { %1133 = vmatpush3.bf16.msra.mxu0 %v1197_v6 }
  0x10   :  { %1165 = vmatpush3.bf16.msra.mxu1 %v1198_v7  ;;  %1134 = vmatprep.subr.bf16.mxu0 %v1199_v8 }
  0x11   :  { %1166 = vmatprep.subr.bf16.mxu1 %v1200_v9 }
  0x13   :  { %1135 = vmatpush3.bf16.msra.mxu0 %v1199_v8 }
  0x14   :  { %1167 = vmatpush3.bf16.msra.mxu1 %v1200_v9  ;;  %1136 = vmatprep.subr.bf16.mxu0 %v1201_v10 }
  0x15   :  { %1168 = vmatprep.subr.bf16.mxu1 %v1202_v11 }
  0x17   :  { %1137 = vmatpush3.bf16.msra.mxu0 %v1201_v10 }
  0x18   :  { %1169 = vmatpush3.bf16.msra.mxu1 %v1202_v11  ;;  %1138 = vmatprep.subr.bf16.mxu0 %v1203_v14 }
  0x19   :  { %1170 = vmatprep.subr.bf16.mxu1 %v1204_v15 }
  0x1b   :  { %1139 = vmatpush3.bf16.msra.mxu0 %v1203_v14 }
  0x1c   :  { %1171 = vmatpush3.bf16.msra.mxu1 %v1204_v15  ;;  %1140 = vmatprep.subr.bf16.mxu0 %v1205_v16 }
  0x1d   :  { %1172 = vmatprep.subr.bf16.mxu1 %v1206_v17 }
  0x1f   :  { %1141 = vmatpush3.bf16.msra.mxu0 %v1205_v16 }
  0x20   :  { %1173 = vmatpush3.bf16.msra.mxu1 %v1206_v17 }
  0x22   :  { %1143 = vmatmul.mubr.bf16.vlgmr.msra.gmra.mrb[0].mxu0 %v1209_v18 }
  0x23   :  { %1175 = vmatmul.mubr.bf16.vlgmr.msra.gmra.mrb[0].mxu1 %v1210_v19  ;;  %1146 = vmatprep.mubr.bf16.mxu0 %v1211_v20 }
  0x24   :  { %1178 = vmatprep.mubr.bf16.mxu1 %v1212_v21 }
  0x2a   :  { %1147 = vmatmul.mubr.bf16.gmra.mrb[4].mxu0 %v1213_v22 }
  0x2b   :  { %1179 = vmatmul.mubr.bf16.gmra.mrb[4].mxu1 %v1214_v23  ;;  %1150 = vmatprep.mubr.bf16.mxu0 %v1215_v24 }
  0x2c   :  { %1182 = vmatprep.mubr.bf16.mxu1 %v1216_v25 }
  0x32   :  { %1151 = vmatmul.mubr.bf16.gmra.mrb[8].mxu0 %v1217_v26 }
  0x33   :  { %1183 = vmatmul.mubr.bf16.gmra.mrb[8].mxu1 %v1218_v27  ;;  %1154 = vmatprep.mubr.bf16.mxu0 %v1219_v28 }
  0x34   :  { %1186 = vmatprep.mubr.bf16.mxu1 %v1220_v29 }
  0x3a   :  { %1155 = vmatmul.mubr.bf16.gmra.mrb[12].mxu0 %v1221_v30 }
  0x3b   :  { %1187 = vmatmul.mubr.bf16.gmra.mrb[12].mxu1 %v1222_v31 }
  0xf5   :  { %v1144_v33 = vpop.f32.mrb[0].mxu0 }
  0xf6   :  { %v1176_v34 = vpop.f32.mrb[0].mxu1  ;;  %v260_v35 = vpop.f32.mrb[1].mxu0  ;;  %v735_v51 = vmul.f32 %v1144_v33, %v1144_v33 }
  0xf7   :  { %v485_v36 = vpop.f32.mrb[1].mxu1  ;;  %v1145_v37 = vpop.f32.mrb[2].mxu0  ;;  %v733_v38 = vmul.f32 %v260_v35, %v260_v35  ;;  %v799_v53 = vmul.f32 %v1176_v34, %v1176_v34 }
  0xf8   :  { %v1008_v39 = vpack.c.bf16 %v1145_v37, %v1144_v33  ;;  %v1177_v40 = vpop.f32.mrb[2].mxu1  ;;  %v263_v41 = vpop.f32.mrb[3].mxu0  ;;  %v797_v42 = vmul.f32 %v485_v36, %v485_v36  ;;  %v736_v57 = vmul.f32 %v1145_v37, %v1145_v37 }
  0xf9   :  { %v1048_v43 = vpack.c.bf16 %v1177_v40, %v1176_v34  ;;  %v1003_v44 = vpack.c.bf16 %v263_v41, %v260_v35  ;;  %v709_v45 = vadd.f32 %v263_v41, %v260_v35  ;;  %v488_v46 = vpop.f32.mrb[3].mxu1  ;;  %v734_v47 = vmul.f32 %v263_v41, %v263_v41 }
  0xfa   :  { %1080 = vst [vmem:[%s1435_s4 + $0x8] sm:$0xff] %v1008_v39   ;;  %v1043_v48 = vpack.c.bf16 %v488_v46, %v485_v36  ;;  %v773_v49 = vadd.f32 %v488_v46, %v485_v36  ;;  %v798_v50 = vmul.f32 %v488_v46, %v488_v46  ;;  %v800_v60 = vmul.f32 %v1177_v40, %v1177_v40 }
  0xfb   :  { %1087 = vst [vmem:[%s1436_s5 + $0x8] sm:$0xff] %v1048_v43   ;;  %1004 = vst [vmem:[%s1435_s4] sm:$0xff] %v1003_v44   ;;  %v710_v52 = vadd.f32 %v1144_v33, %v709_v45  ;;  %v749_v54 = vadd.f32 %v734_v47, %v733_v38 }
  0xfc   :  { %1044 = vst [vmem:[%s1436_s5] sm:$0xff] %v1043_v48   ;;  %v774_v55 = vadd.f32 %v1176_v34, %v773_v49  ;;  %v813_v56 = vadd.f32 %v798_v50, %v797_v42 }
  0xfd   :  { %v1148_v58 = vpop.f32.mrb[4].mxu0  ;;  %v711_v59 = vadd.f32 %v1145_v37, %v710_v52  ;;  %v750_v61 = vadd.f32 %v749_v54, %v735_v51 }
  0xfe   :  { %v814_v62 = vadd.f32 %v813_v56, %v799_v53  ;;  %v1180_v63 = vpop.f32.mrb[4].mxu1  ;;  %v276_v0 = vpop.f32.mrb[5].mxu0  ;;  %v775_v1 = vadd.f32 %v1177_v40, %v774_v55  ;;  %v739_v23 = vmul.f32 %v1148_v58, %v1148_v58 }
  0xff   :  { %v712_v2 = vadd.f32 %v711_v59, %v276_v0  ;;  %v737_v3 = vmul.f32 %v276_v0, %v276_v0  ;;  %v501_v4 = vpop.f32.mrb[5].mxu1  ;;  %v1149_v5 = vpop.f32.mrb[6].mxu0  ;;  %v751_v6 = vadd.f32 %v750_v61, %v736_v57  ;;  %v803_v25 = vmul.f32 %v1180_v63, %v1180_v63 }
 0x100   :  { %v776_v7 = vadd.f32 %v775_v1, %v501_v4  ;;  %v801_v8 = vmul.f32 %v501_v4, %v501_v4  ;;  %v815_v9 = vadd.f32 %v814_v62, %v800_v60  ;;  %v1181_v10 = vpop.f32.mrb[6].mxu1  ;;  %v279_v11 = vpop.f32.mrb[7].mxu0  ;;  %v1018_v12 = vpack.c.bf16 %v1149_v5, %v1148_v58 }
 0x101   :  { %v1058_v13 = vpack.c.bf16 %v1181_v10, %v1180_v63  ;;  %v504_v14 = vpop.f32.mrb[7].mxu1  ;;  %v752_v15 = vadd.f32 %v751_v6, %v737_v3  ;;  %v1013_v17 = vpack.c.bf16 %v279_v11, %v276_v0  ;;  %v713_v18 = vadd.f32 %v712_v2, %v279_v11 }
 0x102   :  { %v816_v16 = vadd.f32 %v815_v9, %v801_v8  ;;  %1082 = vst [vmem:[%s1435_s4 + $0x18] sm:$0xff] %v1018_v12   ;;  %v738_v19 = vmul.f32 %v279_v11, %v279_v11  ;;  %v1053_v20 = vpack.c.bf16 %v504_v14, %v501_v4  ;;  %v777_v21 = vadd.f32 %v776_v7, %v504_v14 }
 0x103   :  { %1089 = vst [vmem:[%s1436_s5 + $0x18] sm:$0xff] %v1058_v13   ;;  %v802_v22 = vmul.f32 %v504_v14, %v504_v14  ;;  %1081 = vst [vmem:[%s1435_s4 + $0x10] sm:$0xff] %v1013_v17   ;;  %v714_v24 = vadd.f32 %v1148_v58, %v713_v18  ;;  %v740_v30 = vmul.f32 %v1149_v5, %v1149_v5 }
 0x104   :  { %v753_v26 = vadd.f32 %v752_v15, %v738_v19  ;;  %1088 = vst [vmem:[%s1436_s5 + $0x10] sm:$0xff] %v1053_v20   ;;  %v778_v27 = vadd.f32 %v1180_v63, %v777_v21  ;;  %v804_v34 = vmul.f32 %v1181_v10, %v1181_v10 }
 0x105   :  { %v817_v28 = vadd.f32 %v816_v16, %v802_v22  ;;  %v1152_v29 = vpop.f32.mrb[8].mxu0  ;;  %v715_v33 = vadd.f32 %v1149_v5, %v714_v24 }
 0x106   :  { %v1184_v31 = vpop.f32.mrb[8].mxu1  ;;  %v292_v32 = vpop.f32.mrb[9].mxu0  ;;  %v754_v35 = vadd.f32 %v753_v26, %v739_v23  ;;  %v779_v41 = vadd.f32 %v1181_v10, %v778_v27  ;;  %v743_v60 = vmul.f32 %v1152_v29, %v1152_v29 }
 0x107   :  { %v818_v36 = vadd.f32 %v817_v28, %v803_v25  ;;  %v741_v37 = vmul.f32 %v292_v32, %v292_v32  ;;  %v517_v38 = vpop.f32.mrb[9].mxu1  ;;  %v1153_v39 = vpop.f32.mrb[10].mxu0  ;;  %v716_v40 = vadd.f32 %v715_v33, %v292_v32  ;;  %v807_v63 = vmul.f32 %v1184_v31, %v1184_v31 }
 0x108   :  { %v805_v42 = vmul.f32 %v517_v38, %v517_v38  ;;  %v1028_v43 = vpack.c.bf16 %v1153_v39, %v1152_v29  ;;  %v1185_v44 = vpop.f32.mrb[10].mxu1  ;;  %v295_v45 = vpop.f32.mrb[11].mxu0  ;;  %v755_v46 = vadd.f32 %v754_v35, %v740_v30  ;;  %v780_v50 = vadd.f32 %v779_v41, %v517_v38 }
 0x109   :  { %v819_v47 = vadd.f32 %v818_v36, %v804_v34  ;;  %v1068_v48 = vpack.c.bf16 %v1185_v44, %v1184_v31  ;;  %v520_v49 = vpop.f32.mrb[11].mxu1  ;;  %v1023_v51 = vpack.c.bf16 %v295_v45, %v292_v32  ;;  %v717_v52 = vadd.f32 %v716_v40, %v295_v45 }
 0x10a   :  { %1084 = vst [vmem:[%s1435_s4 + $0x28] sm:$0xff] %v1028_v43   ;;  %v756_v53 = vadd.f32 %v755_v46, %v741_v37  ;;  %v742_v55 = vmul.f32 %v295_v45, %v295_v45  ;;  %v1063_v56 = vpack.c.bf16 %v520_v49, %v517_v38  ;;  %v781_v58 = vadd.f32 %v780_v50, %v520_v49 }
 0x10b   :  { %v820_v54 = vadd.f32 %v819_v47, %v805_v42  ;;  %1091 = vst [vmem:[%s1436_s5 + $0x28] sm:$0xff] %v1068_v48   ;;  %1083 = vst [vmem:[%s1435_s4 + $0x20] sm:$0xff] %v1023_v51   ;;  %v718_v57 = vadd.f32 %v1152_v29, %v717_v52  ;;  %v806_v59 = vmul.f32 %v520_v49, %v520_v49 }
 0x10c   :  { %v757_v61 = vadd.f32 %v756_v53, %v742_v55  ;;  %1090 = vst [vmem:[%s1436_s5 + $0x20] sm:$0xff] %v1063_v56   ;;  %v782_v0 = vadd.f32 %v1184_v31, %v781_v58  ;;  %v744_v5 = vmul.f32 %v1153_v39, %v1153_v39  ;;  %v808_v6 = vmul.f32 %v1185_v44, %v1185_v44 }
 0x10d   :  { %v1156_v62 = vpop.f32.mrb[12].mxu0  ;;  %v821_v1 = vadd.f32 %v820_v54, %v806_v59  ;;  %v719_v4 = vadd.f32 %v1153_v39, %v718_v57 }
 0x10e   :  { %v1188_v2 = vpop.f32.mrb[12].mxu1  ;;  %v308_v3 = vpop.f32.mrb[13].mxu0  ;;  %v758_v7 = vadd.f32 %v757_v61, %v743_v60  ;;  %v783_v13 = vadd.f32 %v1185_v44, %v782_v0  ;;  %v747_v31 = vmul.f32 %v1156_v62, %v1156_v62  ;;  %v708_v61 = vld [vmem:[%s1434_s6] sm:$0x1] }
 0x10f   :  { %v745_v8 = vmul.f32 %v308_v3, %v308_v3  ;;  %v533_v9 = vpop.f32.mrb[13].mxu1  ;;  %v1157_v10 = vpop.f32.mrb[14].mxu0  ;;  %v822_v11 = vadd.f32 %v821_v1, %v807_v63  ;;  %v720_v12 = vadd.f32 %v719_v4, %v308_v3  ;;  %v811_v34 = vmul.f32 %v1188_v2, %v1188_v2 }
 0x110   :  { %v809_v14 = vmul.f32 %v533_v9, %v533_v9  ;;  %v1189_v15 = vpop.f32.mrb[14].mxu1  ;;  %v311_v16 = vpop.f32.mrb[15].mxu0  ;;  %v759_v17 = vadd.f32 %v758_v7, %v744_v5  ;;  %v1038_v18 = vpack.c.bf16 %v1157_v10, %v1156_v62  ;;  %v784_v21 = vadd.f32 %v783_v13, %v533_v9 }
 0x111   :  { %v1078_v19 = vpack.c.bf16 %v1189_v15, %v1188_v2  ;;  %v536_v20 = vpop.f32.mrb[15].mxu1  ;;  %v823_v22 = vadd.f32 %v822_v11, %v808_v6  ;;  %v1033_v23 = vpack.c.bf16 %v311_v16, %v308_v3  ;;  %v721_v25 = vadd.f32 %v720_v12, %v311_v16  ;;  %v732_v3 = vld [vmem:[%s1434_s6 + $0x1] sm:$0x1] }
 0x112   :  { %v760_v24 = vadd.f32 %v759_v17, %v745_v8  ;;  %1086 = vst [vmem:[%s1435_s4 + $0x38] sm:$0xff] %v1038_v18   ;;  %v746_v26 = vmul.f32 %v311_v16, %v311_v16  ;;  %v1073_v27 = vpack.c.bf16 %v536_v20, %v533_v9  ;;  %v785_v29 = vadd.f32 %v784_v21, %v536_v20  ;;  %v796_v8 = vld [vmem:[%s1434_s6 + $0x3] sm:$0x1] }
 0x113   :  { %1093 = vst [vmem:[%s1436_s5 + $0x38] sm:$0xff] %v1078_v19   ;;  %v824_v28 = vadd.f32 %v823_v22, %v809_v14  ;;  %1085 = vst [vmem:[%s1435_s4 + $0x30] sm:$0xff] %v1033_v23   ;;  %v810_v30 = vmul.f32 %v536_v20, %v536_v20  ;;  %v722_v32 = vadd.f32 %v1156_v62, %v721_v25 }
 0x114   :  { %v761_v33 = vadd.f32 %v760_v24, %v746_v26  ;;  %1092 = vst [vmem:[%s1436_s5 + $0x30] sm:$0xff] %v1073_v27   ;;  %v786_v35 = vadd.f32 %v1188_v2, %v785_v29  ;;  %v748_v37 = vmul.f32 %v1157_v10, %v1157_v10  ;;  %v812_v40 = vmul.f32 %v1189_v15, %v1189_v15  ;;  %v772_v2 = vld [vmem:[%s1434_s6 + $0x2] sm:$0x1] }
 0x115   :  { %v825_v36 = vadd.f32 %v824_v28, %v810_v30  ;;  %v723_v38 = vadd.f32 %v1157_v10, %v722_v32 }
 0x116   :  { %v762_v39 = vadd.f32 %v761_v33, %v747_v31  ;;  %v787_v41 = vadd.f32 %v1189_v15, %v786_v35 }
 0x117   :  { %v826_v42 = vadd.f32 %v825_v36, %v811_v34  ;;  %v724_v43 = vrot.slane %v723_v38, 4 }
 0x118   :  { %v763_v44 = vadd.f32 %v762_v39, %v748_v37  ;;  %v788_v45 = vrot.slane %v787_v41, 4 }
 0x119   :  { %v827_v46 = vadd.f32 %v826_v42, %v812_v40  ;;  %v725_v47 = vadd.f32 %v724_v43, %v723_v38 }
 0x11a   :  { %v764_v48 = vrot.slane %v763_v44, 4  ;;  %v789_v49 = vadd.f32 %v788_v45, %v787_v41 }
 0x11b   :  { %v828_v50 = vrot.slane %v827_v46, 4  ;;  %v726_v51 = vrot.slane %v725_v47, 2 }
 0x11c   :  { %v765_v52 = vadd.f32 %v764_v48, %v763_v44  ;;  %v790_v53 = vrot.slane %v789_v49, 2 }
 0x11d   :  { %v829_v54 = vadd.f32 %v828_v50, %v827_v46  ;;  %v727_v55 = vadd.f32 %v726_v51, %v725_v47 }
 0x11e   :  { %v766_v56 = vrot.slane %v765_v52, 2  ;;  %v791_v57 = vadd.f32 %v790_v53, %v789_v49 }
 0x11f   :  { %v830_v58 = vrot.slane %v829_v54, 2  ;;  %v728_v59 = vrot.slane %v727_v55, 1 }
 0x120   :  { %v767_v60 = vadd.f32 %v766_v56, %v765_v52  ;;  %v792_v62 = vrot.slane %v791_v57, 1 }
 0x121   :  { %v831_v63 = vadd.f32 %v830_v58, %v829_v54  ;;  %v729_v0 = vadd.f32 %v728_v59, %v727_v55 }
 0x122   :  { %v768_v1 = vrot.slane %v767_v60, 1  ;;  %v793_v4 = vadd.f32 %v792_v62, %v791_v57 }
 0x123   :  { %v832_v5 = vrot.slane %v831_v63, 1  ;;  %v730_v6 = vadd.f32 %v729_v0, %v708_v61 }
 0x124   :  { %v769_v7 = vadd.f32 %v768_v1, %v767_v60  ;;  %v794_v9 = vadd.f32 %v793_v4, %v772_v2 }
 0x125   :  { %v833_v10 = vadd.f32 %v832_v5, %v831_v63  ;;  %731 = vst [vmem:[%s1434_s6] sm:$0x1] %v730_v6 }
 0x126   :  { %v770_v11 = vadd.f32 %v769_v7, %v732_v3  ;;  %795 = vst [vmem:[%s1434_s6 + $0x2] sm:$0x1] %v794_v9 }
 0x127   :  { %v834_v12 = vadd.f32 %v833_v10, %v796_v8 }
 0x128   :  { %771 = vst [vmem:[%s1434_s6 + $0x1] sm:$0x1] %v770_v11 }
 0x129   :  { %835 = vst [vmem:[%s1434_s6 + $0x3] sm:$0x1] %v834_v12 }

// kernel: basic_block_forward.7
= control target key start
LH: loop header
LB: loop body
LE: loop exit
PB: predicated region body
PF: predicated region fallthrough
CT: control target
= control target key end

     0   :  { %v66_v4 = vlaneseq  ;;  %v388_v8 = vmov 1966171168   ;;  %s740_s2 = inlined_call_operand.vmem [shape: f32[8,128], index: 2, kind: input, shape index: {}]   ;;  %s741_s0 = inlined_call_operand.vmem [shape: bf16[128,128], index: 0, kind: input, shape index: {}]   ;;  %s742_s1 = inlined_call_operand.vmem [shape: bf16[128,128], index: 1, kind: input, shape index: {}]   ;;  %s743_s3 = inlined_call_operand.vmem [shape: f32[1,128], index: 3, kind: input, shape index: {}]   ;;  %s744_s5 = inlined_call_operand.vmem [shape: f32[1,128], index: 5, kind: input, shape index: {}]   ;;  %s745_s4 = inlined_call_operand.vmem [shape: f32[1,128], index: 4, kind: input, shape index: {}]   ;;  %s746_s6 = inlined_call_operand.vmem [shape: f32[1,128], index: 6, kind: input, shape index: {}]   ;;  %s747_s7 = inlined_call_operand.vmem [shape: f32[128,128], index: 7, kind: output, shape index: {}]  }
   0x1   :  { %v26_v0 = vld [vmem:[%s740_s2] sm:$0xff]  ;;  %v91_v9 = vunpack.c.l.s4 %v388_v8  ;;  %v371_v16 = vld [vmem:[%s741_s0 + $0x8] sm:$0xff]   ;;  %v372_v21 = vld [vmem:[%s741_s0 + $0x10] sm:$0xff]  }
   0x2   :  { %v27_v1 = vmul.f32 0.0078125, %v26_v0  ;;  %v67_v7 = vshrl.u32 %v66_v4, 7  ;;  %v308_v12 = vld [vmem:[%s741_s0] sm:$0xff]   ;;  %v378_v17 = vld [vmem:[%s742_s1 + $0x8] sm:$0xff]   ;;  %v379_v22 = vld [vmem:[%s742_s1 + $0x10] sm:$0xff]   ;;  %v313_v26 = vunpack.c.l.bf16 %v371_v16  ;;  %v314_v31 = vunpack.c.h.bf16 %v371_v16 }
   0x3   :  { %v92_v14 = vunpack.c.0.s8 %v91_v9  ;;  %v340_v15 = vld [vmem:[%s742_s1] sm:$0xff]   ;;  %v309_v18 = vunpack.c.l.bf16 %v308_v12  ;;  %v310_v20 = vunpack.c.h.bf16 %v308_v12  ;;  %v373_v27 = vld [vmem:[%s741_s0 + $0x18] sm:$0xff]   ;;  %v345_v30 = vunpack.c.l.bf16 %v378_v17  ;;  %v375_v54 = vld [vmem:[%s741_s0 + $0x28] sm:$0xff]  }
   0x4   :  { %v28_v2 = vmul.f32 %v27_v1, %v27_v1  ;;  %v432_v10 = vsub.s32 0, %v67_v7  ;;  %v186_v13 = vsub.s32 2, %v67_v7  ;;  %v341_v23 = vunpack.c.l.bf16 %v340_v15  ;;  %v380_v28 = vld [vmem:[%s742_s1 + $0x18] sm:$0xff]   ;;  %v374_v36 = vld [vmem:[%s741_s0 + $0x20] sm:$0xff]   ;;  %v382_v60 = vld [vmem:[%s742_s1 + $0x28] sm:$0xff]  }
   0x5   :  { %v342_v25 = vunpack.c.h.bf16 %v340_v15  ;;  %v95_v29 = vsub.s32 %v92_v14, %v67_v7  ;;  %v346_v32 = vunpack.c.h.bf16 %v378_v17  ;;  %v317_v33 = vunpack.c.l.bf16 %v372_v21  ;;  %v381_v41 = vld [vmem:[%s742_s1 + $0x20] sm:$0xff]   ;;  %v377_v12 = vld [vmem:[%s741_s0 + $0x38] sm:$0xff]  }
   0x6   :  { %v30_v3 = vrot.slane %v28_v2, 7  ;;  %v447_v19 = vrot.slane %v27_v1, %v432_v10  ;;  %v455_v24 = vrot.slane %v27_v1, %v186_v13  ;;  %v349_v34 = vunpack.c.l.bf16 %v379_v22  ;;  %v383_v2 = vld [vmem:[%s742_s1 + $0x30] sm:$0xff]   ;;  %v384_v13 = vld [vmem:[%s742_s1 + $0x38] sm:$0xff]   ;;  %v86_v14 = vld [vmem:[%s743_s3] sm:$0x1] }
   0x7   :  { %v318_v35 = vunpack.c.h.bf16 %v372_v21  ;;  %v350_v38 = vunpack.c.h.bf16 %v379_v22  ;;  %v321_v39 = vunpack.c.l.bf16 %v373_v27  ;;  %v353_v40 = vunpack.c.l.bf16 %v380_v28 }
   0x8   :  { %v32_v5 = vsub.f32 %v27_v1, %v30_v3  ;;  %v467_v37 = vsub.f32 %v309_v18, %v447_v19  ;;  %v473_v42 = vsub.f32 %v341_v23, %v455_v24  ;;  %v476_v43 = vsub.f32 %v310_v20, %v447_v19  ;;  %v376_v1 = vld [vmem:[%s741_s0 + $0x30] sm:$0xff]  }
   0x9   :  { %v479_v44 = vsub.f32 %v342_v25, %v455_v24  ;;  %v482_v45 = vsub.f32 %v313_v26, %v447_v19  ;;  %v485_v46 = vsub.f32 %v345_v30, %v455_v24  ;;  %v322_v47 = vunpack.c.h.bf16 %v373_v27  ;;  %v204_v25 = vld [vmem:[%s744_s5] sm:$0x1] }
   0xa   :  { %v33_v6 = vmax.f32 %v32_v5, 0.0  ;;  %v354_v48 = vunpack.c.h.bf16 %v380_v28  ;;  %v325_v49 = vunpack.c.l.bf16 %v374_v36  ;;  %v488_v50 = vsub.f32 %v314_v31, %v447_v19 }
   0xb   :  { %v491_v51 = vsub.f32 %v346_v32, %v455_v24  ;;  %v357_v52 = vunpack.c.l.bf16 %v381_v41  ;;  %v326_v53 = vunpack.c.h.bf16 %v374_v36  ;;  %v74_v56 = vsub.f32 %v317_v33, %v447_v19 }
   0xc   :  { %v87_v11 = vadd.f32 1e-05, %v33_v6  ;;  %v498_v57 = vsub.f32 %v349_v34, %v455_v24  ;;  %v75_v58 = vsub.f32 %v318_v35, %v447_v19  ;;  %v502_v59 = vsub.f32 %v350_v38, %v455_v24 }
   0xd   :  { %v76_v62 = vsub.f32 %v321_v39, %v447_v19  ;;  %v509_v63 = vsub.f32 %v353_v40, %v455_v24  ;;  %v358_v0 = vunpack.c.h.bf16 %v381_v41  ;;  %v518_v3 = vsub.f32 %v322_v47, %v447_v19 }
   0xe   :  { %386 = vrsqrt.f32 %v87_v11  ;;  %v521_v4 = vsub.f32 %v354_v48, %v455_v24  ;;  %v524_v5 = vsub.f32 %v325_v49, %v447_v19  ;;  %v329_v6 = vunpack.c.l.bf16 %v375_v54  ;;  %v577_v48 = vld [vmem:[%s745_s4] ss:$0 sm:$0xff] }
   0xf   :  { %v527_v8 = vsub.f32 %v357_v52, %v455_v24  ;;  %v530_v9 = vsub.f32 %v326_v53, %v447_v19  ;;  %v361_v11 = vunpack.c.l.bf16 %v382_v60  ;;  %v330_v15 = vunpack.c.h.bf16 %v375_v54 }
  0x10   :  { %v362_v16 = vunpack.c.h.bf16 %v382_v60  ;;  %v333_v17 = vunpack.c.l.bf16 %v376_v1  ;;  %v365_v18 = vunpack.c.l.bf16 %v383_v2  ;;  %v542_v21 = vsub.f32 %v358_v0, %v455_v24 }
  0x11   :  { %v334_v22 = vunpack.c.h.bf16 %v376_v1  ;;  %v366_v23 = vunpack.c.h.bf16 %v383_v2  ;;  %v337_v26 = vunpack.c.l.bf16 %v377_v12  ;;  %v369_v27 = vunpack.c.l.bf16 %v384_v13 }
  0x12   :  { %v338_v28 = vunpack.c.h.bf16 %v377_v12  ;;  %v370_v30 = vunpack.c.h.bf16 %v384_v13  ;;  %v548_v33 = vsub.f32 %v329_v6, %v447_v19  ;;  %v554_v34 = vsub.f32 %v330_v15, %v447_v19 }
  0x13   :  { %v557_v35 = vsub.f32 %v362_v16, %v455_v24  ;;  %v560_v36 = vsub.f32 %v333_v17, %v447_v19  ;;  %v563_v38 = vsub.f32 %v365_v18, %v455_v24  ;;  %v569_v41 = vsub.f32 %v334_v22, %v447_v19 }
  0x14   :  { %v572_v47 = vsub.f32 %v366_v23, %v455_v24  ;;  %v580_v49 = vsub.f32 %v337_v26, %v447_v19  ;;  %v583_v52 = vsub.f32 %v369_v27, %v455_v24  ;;  %v586_v53 = vsub.f32 %v338_v28, %v447_v19  ;;  %v603_v19 = vld [vmem:[%s746_s6] ss:$0 sm:$0xff] }
  0x15   :  { %v589_v54 = vsub.f32 %v370_v30, %v455_v24 }
  0x18   :  { %v387_v55 = vpop.eup %386 }
  0x19   :  { %v96_v61 = vrot.slane %v387_v55, %v95_v29 }
  0x1b   :  { %v97_v7 = vcombine.high %v96_v61, %v96_v61 }
  0x1d   :  { %v104_v20 = vrot.slane %v97_v7, %v95_v29  ;;  %v551_v29 = vsub.f32 %v361_v11, %v455_v24 }
  0x1f   :  { %v106_v31 = vmul.f32 %v104_v20, %v86_v14  ;;  %v205_v32 = vcombine.high %v104_v20, %v104_v20 }
  0x21   :  { %v566_v39 = vrot.slane %v106_v31, %v432_v10  ;;  %v207_v40 = vmul.f32 %v205_v32, %v204_v25 }
  0x23   :  { %v113_v55 = vmul.f32 %v566_v39, %v467_v37  ;;  %v594_v60 = vrot.slane %v207_v40, %v432_v10  ;;  %v114_v61 = vmul.f32 %v566_v39, %v476_v43  ;;  %v115_v0 = vmul.f32 %v566_v39, %v482_v45 }
  0x24   :  { %v116_v24 = vmul.f32 %v566_v39, %v488_v50  ;;  %v117_v1 = vmul.f32 %v566_v39, %v74_v56  ;;  %v118_v37 = vmul.f32 %v566_v39, %v75_v58  ;;  %v119_v10 = vmul.f32 %v566_v39, %v76_v62 }
  0x25   :  { %v136_v2 = vadd.f32 %v577_v48, %v113_v55  ;;  %v214_v43 = vmul.f32 %v594_v60, %v473_v42  ;;  %v137_v45 = vadd.f32 %v577_v48, %v114_v61  ;;  %v215_v6 = vmul.f32 %v594_v60, %v479_v44 }
  0x26   :  { %v138_v7 = vadd.f32 %v577_v48, %v115_v0  ;;  %v216_v50 = vmul.f32 %v594_v60, %v485_v46  ;;  %v139_v56 = vadd.f32 %v577_v48, %v116_v24  ;;  %v217_v58 = vmul.f32 %v594_v60, %v491_v51 }
  0x27   :  { %v237_v62 = vadd.f32 %v603_v19, %v214_v43  ;;  %v238_v11 = vadd.f32 %v603_v19, %v215_v6  ;;  %v140_v42 = vadd.f32 %v577_v48, %v117_v1  ;;  %v218_v12 = vmul.f32 %v594_v60, %v498_v57 }
  0x28   :  { %v239_v44 = vadd.f32 %v603_v19, %v216_v50  ;;  %v240_v13 = vadd.f32 %v603_v19, %v217_v58  ;;  %v141_v46 = vadd.f32 %v577_v48, %v118_v37  ;;  %v219_v14 = vmul.f32 %v594_v60, %v502_v59 }
  0x29   :  { %v253_v15 = vadd.f32 %v237_v62, %v136_v2  ;;  %v254_v51 = vadd.f32 %v238_v11, %v137_v45  ;;  %v241_v16 = vadd.f32 %v603_v19, %v218_v12  ;;  %v142_v17 = vadd.f32 %v577_v48, %v119_v10 }
  0x2a   :  { %v255_v18 = vadd.f32 %v239_v44, %v138_v7  ;;  %v256_v20 = vadd.f32 %v240_v13, %v139_v56  ;;  %v242_v22 = vadd.f32 %v603_v19, %v219_v14  ;;  %v220_v57 = vmul.f32 %v594_v60, %v509_v63 }
  0x2b   :  { %v269_v23 = vmax.f32 %v253_v15, 0.0  ;;  %v270_v25 = vmax.f32 %v254_v51, 0.0  ;;  %v257_v26 = vadd.f32 %v241_v16, %v140_v42  ;;  %v120_v27 = vmul.f32 %v566_v39, %v518_v3 }
  0x2c   :  { %v271_v59 = vmax.f32 %v255_v18, 0.0  ;;  %v272_v28 = vmax.f32 %v256_v20, 0.0  ;;  %v258_v30 = vadd.f32 %v242_v22, %v141_v46  ;;  %v243_v31 = vadd.f32 %v603_v19, %v220_v57 }
  0x2d   :  { %285 = vst [vmem:[%s747_s7] sm:$0xff] %v269_v23  ;;  %286 = vst [vmem:[%s747_s7 + $0x8] sm:$0xff] %v270_v25  ;;  %v273_v63 = vmax.f32 %v257_v26, 0.0  ;;  %v143_v32 = vadd.f32 %v577_v48, %v120_v27  ;;  %v221_v40 = vmul.f32 %v594_v60, %v521_v4  ;;  %v121_v3 = vmul.f32 %v566_v39, %v524_v5 }
  0x2e   :  { %287 = vst [vmem:[%s747_s7 + $0x10] sm:$0xff] %v271_v59  ;;  %288 = vst [vmem:[%s747_s7 + $0x18] sm:$0xff] %v272_v28  ;;  %v274_v55 = vmax.f32 %v258_v30, 0.0  ;;  %v259_v61 = vadd.f32 %v243_v31, %v142_v17  ;;  %v222_v0 = vmul.f32 %v594_v60, %v527_v8  ;;  %v122_v24 = vmul.f32 %v566_v39, %v530_v9 }
  0x2f   :  { %289 = vst [vmem:[%s747_s7 + $0x20] sm:$0xff] %v273_v63  ;;  %v244_v4 = vadd.f32 %v603_v19, %v221_v40  ;;  %v144_v5 = vadd.f32 %v577_v48, %v121_v3  ;;  %v223_v1 = vmul.f32 %v594_v60, %v542_v21  ;;  %v123_v37 = vmul.f32 %v566_v39, %v548_v33 }
  0x30   :  { %290 = vst [vmem:[%s747_s7 + $0x28] sm:$0xff] %v274_v55  ;;  %v275_v8 = vmax.f32 %v259_v61, 0.0  ;;  %v245_v9 = vadd.f32 %v603_v19, %v222_v0  ;;  %v145_v10 = vadd.f32 %v577_v48, %v122_v24  ;;  %v224_v2 = vmul.f32 %v594_v60, %v551_v29 }
  0x31   :  { %v260_v43 = vadd.f32 %v244_v4, %v143_v32  ;;  %v246_v45 = vadd.f32 %v603_v19, %v223_v1  ;;  %v146_v21 = vadd.f32 %v577_v48, %v123_v37  ;;  %v124_v33 = vmul.f32 %v566_v39, %v554_v34 }
  0x32   :  { %291 = vst [vmem:[%s747_s7 + $0x30] sm:$0xff] %v275_v8  ;;  %v261_v6 = vadd.f32 %v245_v9, %v144_v5  ;;  %v247_v7 = vadd.f32 %v603_v19, %v224_v2  ;;  %v225_v50 = vmul.f32 %v594_v60, %v557_v35  ;;  %v125_v29 = vmul.f32 %v566_v39, %v560_v36 }
  0x33   :  { %v276_v56 = vmax.f32 %v260_v43, 0.0  ;;  %v262_v58 = vadd.f32 %v246_v45, %v145_v10  ;;  %v147_v62 = vadd.f32 %v577_v48, %v124_v33  ;;  %v226_v34 = vmul.f32 %v594_v60, %v563_v38 }
  0x34   :  { %v277_v11 = vmax.f32 %v261_v6, 0.0  ;;  %v263_v42 = vadd.f32 %v247_v7, %v146_v21  ;;  %v248_v12 = vadd.f32 %v603_v19, %v225_v50  ;;  %v148_v44 = vadd.f32 %v577_v48, %v125_v29 }
  0x35   :  { %292 = vst [vmem:[%s747_s7 + $0x38] sm:$0xff] %v276_v56  ;;  %v278_v35 = vmax.f32 %v262_v58, 0.0  ;;  %v249_v36 = vadd.f32 %v603_v19, %v226_v34  ;;  %v126_v13 = vmul.f32 %v566_v39, %v569_v41  ;;  %v227_v46 = vmul.f32 %v594_v60, %v572_v47 }
  0x36   :  { %293 = vst [vmem:[%s747_s7 + $0x40] sm:$0xff] %v277_v11  ;;  %v279_v38 = vmax.f32 %v263_v42, 0.0  ;;  %v264_v14 = vadd.f32 %v248_v12, %v147_v62  ;;  %v127_v15 = vmul.f32 %v566_v39, %v580_v49  ;;  %v228_v51 = vmul.f32 %v594_v60, %v583_v52 }
  0x37   :  { %294 = vst [vmem:[%s747_s7 + $0x48] sm:$0xff] %v278_v35  ;;  %v265_v41 = vadd.f32 %v249_v36, %v148_v44  ;;  %v149_v16 = vadd.f32 %v577_v48, %v126_v13  ;;  %v250_v47 = vadd.f32 %v603_v19, %v227_v46  ;;  %v128_v17 = vmul.f32 %v566_v39, %v586_v53 }
  0x38   :  { %295 = vst [vmem:[%s747_s7 + $0x50] sm:$0xff] %v279_v38  ;;  %v280_v49 = vmax.f32 %v264_v14, 0.0  ;;  %v150_v18 = vadd.f32 %v577_v48, %v127_v15  ;;  %v251_v52 = vadd.f32 %v603_v19, %v228_v51  ;;  %v229_v20 = vmul.f32 %v594_v60, %v589_v54 }
  0x39   :  { %v281_v22 = vmax.f32 %v265_v41, 0.0  ;;  %v266_v57 = vadd.f32 %v250_v47, %v149_v16  ;;  %v151_v23 = vadd.f32 %v577_v48, %v128_v17 }
  0x3a   :  { %296 = vst [vmem:[%s747_s7 + $0x58] sm:$0xff] %v280_v49  ;;  %v267_v39 = vadd.f32 %v251_v52, %v150_v18  ;;  %v252_v53 = vadd.f32 %v603_v19, %v229_v20 }
  0x3b   :  { %297 = vst [vmem:[%s747_s7 + $0x60] sm:$0xff] %v281_v22  ;;  %v282_v25 = vmax.f32 %v266_v57, 0.0 }
  0x3c   :  { %v283_v26 = vmax.f32 %v267_v39, 0.0  ;;  %v268_v27 = vadd.f32 %v252_v53, %v151_v23 }
  0x3d   :  { %298 = vst [vmem:[%s747_s7 + $0x68] sm:$0xff] %v282_v25 }
  0x3e   :  { %299 = vst [vmem:[%s747_s7 + $0x70] sm:$0xff] %v283_v26  ;;  %v284_v48 = vmax.f32 %v268_v27, 0.0 }
  0x40   :  { %300 = vst [vmem:[%s747_s7 + $0x78] sm:$0xff] %v284_v48 }

</bundles_post_ra>
